<compile_context>
chip_gen: v7x
topology: tpu7x:2x2x1
jax: 0.10.0
libtpu: 0.0.40
codegen_flags: <defaults>
</compile_context>

<pallas_src>
import math
import jax
import jax.numpy as jnp
from jax.experimental import pallas as pl
from jax.experimental.pallas import tpu as pltpu

# --- small synthetic config (consistent with a Transformer encoder) ---
B, S, D = 2, 8, 32        # batch, sequence, d_model
H = 4                     # attention heads
DH = D // H               # per-head dim
DFF = 64                  # FFN hidden dim
N_LAYER = 2               # number of encoder blocks
EPS = 1e-5                # nn.LayerNorm default eps

# rows of the packed per-layer (6, D) vector block
_BO, _LN1G, _LN1B, _B2, _LN2G, _LN2B = range(6)


def _layer_norm(x, gamma, beta):
    mean = jnp.mean(x, axis=-1, keepdims=True)
    var = jnp.mean((x - mean) ** 2, axis=-1, keepdims=True)
    return (x - mean) * jax.lax.rsqrt(var + EPS) * gamma + beta


def _encoder_layer(x2d, w_qkv, w_o, w1, w2, b_wide, vd):
    """One post-norm Transformer encoder block on the (B*S, D) activation slab (f32)."""
    b_qkv = b_wide[:, 0:3 * D]                 # (1, 3D)
    b_ff1 = b_wide[:, 3 * D:3 * D + DFF]       # (1, DFF)
    bo    = vd[_BO:_BO + 1, :]
    ln1_g = vd[_LN1G:_LN1G + 1, :]
    ln1_b = vd[_LN1B:_LN1B + 1, :]
    b2    = vd[_B2:_B2 + 1, :]
    ln2_g = vd[_LN2G:_LN2G + 1, :]
    ln2_b = vd[_LN2B:_LN2B + 1, :]

    # ---- multi-head self-attention sublayer ----
    qkv = jnp.dot(x2d.astype(jnp.bfloat16), w_qkv,
                  preferred_element_type=jnp.float32) + b_qkv          # (B*S, 3D)
    qkv3 = qkv.reshape(B, S, 3 * D)                                    # leading-dim split only

    def gather_heads(base):
        # head lane-slices stacked onto a single leading batch axis -> (H*B, S, DH)
        return jnp.concatenate(
            [qkv3[:, :, base + h * DH: base + (h + 1) * DH] for h in range(H)], axis=0)

    qh = gather_heads(0)
    kh = gather_heads(D)
    vh = gather_heads(2 * D)

    scores = jnp.einsum('bqd,bkd->bqk',
                        qh.astype(jnp.bfloat16), kh.astype(jnp.bfloat16),
                        preferred_element_type=jnp.float32) * (1.0 / math.sqrt(DH))
    scores = scores - jnp.max(scores, axis=-1, keepdims=True)
    p = jnp.exp(scores)
    p = p / jnp.sum(p, axis=-1, keepdims=True)                         # exact softmax
    ctx = jnp.einsum('bqk,bkd->bqd',
                     p.astype(jnp.bfloat16), vh.astype(jnp.bfloat16),
                     preferred_element_type=jnp.float32)               # (H*B, S, DH)

    # heads back to lanes -> (B, S, D) -> (B*S, D); ONE output projection.
    ctx2d = jnp.concatenate([ctx[h * B:(h + 1) * B] for h in range(H)],
                            axis=-1).reshape(B * S, D)
    attn = jnp.dot(ctx2d.astype(jnp.bfloat16), w_o,
                   preferred_element_type=jnp.float32) + bo
    x2d = _layer_norm(x2d + attn, ln1_g, ln1_b)                        # post-norm residual 1

    # ---- position-wise FFN sublayer ----
    h1 = jnp.maximum(
        jnp.dot(x2d.astype(jnp.bfloat16), w1, preferred_element_type=jnp.float32) + b_ff1,
        0.0)
    h2 = jnp.dot(h1.astype(jnp.bfloat16), w2, preferred_element_type=jnp.float32) + b2
    return _layer_norm(x2d + h2, ln2_g, ln2_b)                         # post-norm residual 2


def encoder_kernel(x_ref, w_qkv_ref, w_o_ref, w1_ref, w2_ref,
                   b_wide_ref, vec_d_ref, final_ln_ref, out_ref):
    # Whole problem in one invocation: x_ref is the full (B*S, D) slab, weight refs are
    # stacked (N_LAYER, ...) and indexed with a static layer index (static unroll).
    x = x_ref[...].astype(jnp.float32)
    for l in range(N_LAYER):
        x = _encoder_layer(x, w_qkv_ref[l], w_o_ref[l], w1_ref[l], w2_ref[l],
                           b_wide_ref[l], vec_d_ref[l])
    # final Encoder.norm
    fl = final_ln_ref[...]
    out_ref[...] = _layer_norm(x, fl[0:1, :], fl[1:2, :]).astype(out_ref.dtype)


def encoder_forward(src, params):
    """src: (B, S, D). Single fused, grid-less pallas_call; everything VMEM-resident."""
    x2d = src.reshape(B * S, D)
    vmem = pltpu.MemorySpace.VMEM
    out2d = pl.pallas_call(
        encoder_kernel,
        out_shape=jax.ShapeDtypeStruct((B * S, D), src.dtype),
        in_specs=[pl.BlockSpec(memory_space=vmem)] * (1 + len(params)),
        out_specs=pl.BlockSpec(memory_space=vmem),
        compiler_params=pltpu.CompilerParams(vmem_limit_bytes=32 * 1024 * 1024),
    )(x2d, *params)
    return out2d.reshape(B, S, D)


def init_params(key):
    """All-layer weights, stacked along a leading layer axis and packed into few buffers."""
    ks = jax.random.split(key, 6)
    scale = 0.02

    def w(k, shape):
        return (scale * jax.random.normal(k, (N_LAYER,) + shape, jnp.float32)
                ).astype(jnp.bfloat16)               # MXU weights stored bf16

    wq = w(ks[0], (D, D))
    wk = w(ks[1], (D, D))
    wv = w(ks[2], (D, D))
    w_qkv = jnp.concatenate([wq, wk, wv], axis=-1)   # (L, D, 3D) fused QKV weight
    w_o = w(ks[3], (D, D))
    w1 = w(ks[4], (D, DFF))
    w2 = w(ks[5], (DFF, D))

    # per-layer wide bias row: [b_q | b_k | b_v | b_ff1]  (zeros, like the reference Linear init here)
    b_wide = jnp.zeros((N_LAYER, 1, 3 * D + DFF), jnp.float32)

    # per-layer D-wide vectors: [b_o, ln1_gamma, ln1_beta, b_ff2, ln2_gamma, ln2_beta]
    vec_d = jnp.zeros((N_LAYER, 6, D), jnp.float32)
    vec_d = vec_d.at[:, _LN1G, :].set(1.0)
    vec_d = vec_d.at[:, _LN2G, :].set(1.0)

    # final Encoder.norm params, rows [gamma, beta]
    final_ln = jnp.concatenate([jnp.ones((1, D), jnp.float32),
                                jnp.zeros((1, D), jnp.float32)], axis=0)

    return (w_qkv, w_o, w1, w2, b_wide, vec_d, final_ln)


if __name__ == "__main__":
    key = jax.random.PRNGKey(0)
    k_x, k_p = jax.random.split(key)

    src = jax.random.normal(k_x, (B, S, D), jnp.float32)
    params = init_params(k_p)

    out = encoder_forward(src, params)
    jax.block_until_ready(out)
    assert out.shape == (B, S, D)
    print("KERNEL_OK")
</pallas_src>

<mosaic_0001>
module attributes {stable_mosaic.version = 11 : i64} {
  func.func @encoder_kernel(%arg0: memref<16x32xf32, #tpu.memory_space<vmem>>, %arg1: memref<2x32x96xbf16, #tpu.memory_space<vmem>>, %arg2: memref<2x32x32xbf16, #tpu.memory_space<vmem>>, %arg3: memref<2x32x64xbf16, #tpu.memory_space<vmem>>, %arg4: memref<2x64x32xbf16, #tpu.memory_space<vmem>>, %arg5: memref<2x1x160xf32, #tpu.memory_space<vmem>>, %arg6: memref<2x6x32xf32, #tpu.memory_space<vmem>>, %arg7: memref<2x32xf32, #tpu.memory_space<vmem>>, %arg8: memref<16x32xf32, #tpu.memory_space<vmem>>) attributes {dimension_semantics = [], scalar_prefetch = 0 : i64, scratch_operands = 0 : i64, tpu.core_type = #tpu.core_type<tc>} {
    %c0 = arith.constant 0 : index
    %c0_0 = arith.constant 0 : index
    %0 = vector.load %arg0[%c0, %c0_0] : memref<16x32xf32, #tpu.memory_space<vmem>>, vector<16x32xf32>
    %c0_1 = arith.constant 0 : index
    %c0_2 = arith.constant 0 : index
    %c0_3 = arith.constant 0 : index
    %1 = vector.load %arg1[%c0_1, %c0_2, %c0_3] : memref<2x32x96xbf16, #tpu.memory_space<vmem>>, vector<1x32x96xbf16>
    %2 = vector.shape_cast %1 : vector<1x32x96xbf16> to vector<32x96xbf16>
    %c0_4 = arith.constant 0 : index
    %c0_5 = arith.constant 0 : index
    %c0_6 = arith.constant 0 : index
    %3 = vector.load %arg2[%c0_4, %c0_5, %c0_6] : memref<2x32x32xbf16, #tpu.memory_space<vmem>>, vector<1x32x32xbf16>
    %4 = vector.shape_cast %3 : vector<1x32x32xbf16> to vector<32x32xbf16>
    %c0_7 = arith.constant 0 : index
    %c0_8 = arith.constant 0 : index
    %c0_9 = arith.constant 0 : index
    %5 = vector.load %arg3[%c0_7, %c0_8, %c0_9] : memref<2x32x64xbf16, #tpu.memory_space<vmem>>, vector<1x32x64xbf16>
    %6 = vector.shape_cast %5 : vector<1x32x64xbf16> to vector<32x64xbf16>
    %c0_10 = arith.constant 0 : index
    %c0_11 = arith.constant 0 : index
    %c0_12 = arith.constant 0 : index
    %7 = vector.load %arg4[%c0_10, %c0_11, %c0_12] : memref<2x64x32xbf16, #tpu.memory_space<vmem>>, vector<1x64x32xbf16>
    %8 = vector.shape_cast %7 : vector<1x64x32xbf16> to vector<64x32xbf16>
    %c0_13 = arith.constant 0 : index
    %c0_14 = arith.constant 0 : index
    %c0_15 = arith.constant 0 : index
    %9 = vector.load %arg5[%c0_13, %c0_14, %c0_15] : memref<2x1x160xf32, #tpu.memory_space<vmem>>, vector<1x1x160xf32>
    %10 = vector.shape_cast %9 : vector<1x1x160xf32> to vector<1x160xf32>
    %c0_16 = arith.constant 0 : index
    %c0_17 = arith.constant 0 : index
    %c0_18 = arith.constant 0 : index
    %11 = vector.load %arg6[%c0_16, %c0_17, %c0_18] : memref<2x6x32xf32, #tpu.memory_space<vmem>>, vector<1x6x32xf32>
    %12 = vector.shape_cast %11 : vector<1x6x32xf32> to vector<6x32xf32>
    %13 = vector.extract_strided_slice %10 {offsets = [0, 0], sizes = [1, 96], strides = [1, 1]} : vector<1x160xf32> to vector<1x96xf32>
    %14 = vector.extract_strided_slice %10 {offsets = [0, 96], sizes = [1, 64], strides = [1, 1]} : vector<1x160xf32> to vector<1x64xf32>
    %15 = vector.extract_strided_slice %12 {offsets = [0, 0], sizes = [1, 32], strides = [1, 1]} : vector<6x32xf32> to vector<1x32xf32>
    %16 = vector.extract_strided_slice %12 {offsets = [1, 0], sizes = [1, 32], strides = [1, 1]} : vector<6x32xf32> to vector<1x32xf32>
    %17 = vector.extract_strided_slice %12 {offsets = [2, 0], sizes = [1, 32], strides = [1, 1]} : vector<6x32xf32> to vector<1x32xf32>
    %18 = vector.extract_strided_slice %12 {offsets = [3, 0], sizes = [1, 32], strides = [1, 1]} : vector<6x32xf32> to vector<1x32xf32>
    %19 = vector.extract_strided_slice %12 {offsets = [4, 0], sizes = [1, 32], strides = [1, 1]} : vector<6x32xf32> to vector<1x32xf32>
    %20 = vector.extract_strided_slice %12 {offsets = [5, 0], sizes = [1, 32], strides = [1, 1]} : vector<6x32xf32> to vector<1x32xf32>
    %21 = arith.truncf %0 : vector<16x32xf32> to vector<16x32xbf16>
    %cst = arith.constant dense<0.000000e+00> : vector<16x96xf32>
    %22 = tpu.matmul %21, %2, %cst {dimension_numbers = #tpu.dot_dimension_numbers<[1], [0], [0], [1], [0, 0, 1, 1], [], []>} : vector<16x32xbf16>, vector<32x96xbf16>, vector<16x96xf32> -> vector<16x96xf32>
    %23 = vector.broadcast %13 : vector<1x96xf32> to vector<16x96xf32>
    %24 = arith.addf %22, %23 : vector<16x96xf32>
    %25 = vector.shape_cast %24 : vector<16x96xf32> to vector<2x8x96xf32>
    %26 = vector.extract_strided_slice %25 {offsets = [0, 0, 0], sizes = [2, 8, 8], strides = [1, 1, 1]} : vector<2x8x96xf32> to vector<2x8x8xf32>
    %27 = vector.extract_strided_slice %25 {offsets = [0, 0, 8], sizes = [2, 8, 8], strides = [1, 1, 1]} : vector<2x8x96xf32> to vector<2x8x8xf32>
    %28 = vector.extract_strided_slice %25 {offsets = [0, 0, 16], sizes = [2, 8, 8], strides = [1, 1, 1]} : vector<2x8x96xf32> to vector<2x8x8xf32>
    %29 = vector.extract_strided_slice %25 {offsets = [0, 0, 24], sizes = [2, 8, 8], strides = [1, 1, 1]} : vector<2x8x96xf32> to vector<2x8x8xf32>
    %30 = tpu.concatenate %26, %27, %28, %29 in 0 : vector<2x8x8xf32>, vector<2x8x8xf32>, vector<2x8x8xf32>, vector<2x8x8xf32> -> vector<8x8x8xf32>
    %31 = vector.extract_strided_slice %25 {offsets = [0, 0, 32], sizes = [2, 8, 8], strides = [1, 1, 1]} : vector<2x8x96xf32> to vector<2x8x8xf32>
    %32 = vector.extract_strided_slice %25 {offsets = [0, 0, 40], sizes = [2, 8, 8], strides = [1, 1, 1]} : vector<2x8x96xf32> to vector<2x8x8xf32>
    %33 = vector.extract_strided_slice %25 {offsets = [0, 0, 48], sizes = [2, 8, 8], strides = [1, 1, 1]} : vector<2x8x96xf32> to vector<2x8x8xf32>
    %34 = vector.extract_strided_slice %25 {offsets = [0, 0, 56], sizes = [2, 8, 8], strides = [1, 1, 1]} : vector<2x8x96xf32> to vector<2x8x8xf32>
    %35 = tpu.concatenate %31, %32, %33, %34 in 0 : vector<2x8x8xf32>, vector<2x8x8xf32>, vector<2x8x8xf32>, vector<2x8x8xf32> -> vector<8x8x8xf32>
    %36 = vector.extract_strided_slice %25 {offsets = [0, 0, 64], sizes = [2, 8, 8], strides = [1, 1, 1]} : vector<2x8x96xf32> to vector<2x8x8xf32>
    %37 = vector.extract_strided_slice %25 {offsets = [0, 0, 72], sizes = [2, 8, 8], strides = [1, 1, 1]} : vector<2x8x96xf32> to vector<2x8x8xf32>
    %38 = vector.extract_strided_slice %25 {offsets = [0, 0, 80], sizes = [2, 8, 8], strides = [1, 1, 1]} : vector<2x8x96xf32> to vector<2x8x8xf32>
    %39 = vector.extract_strided_slice %25 {offsets = [0, 0, 88], sizes = [2, 8, 8], strides = [1, 1, 1]} : vector<2x8x96xf32> to vector<2x8x8xf32>
    %40 = tpu.concatenate %36, %37, %38, %39 in 0 : vector<2x8x8xf32>, vector<2x8x8xf32>, vector<2x8x8xf32>, vector<2x8x8xf32> -> vector<8x8x8xf32>
    %41 = arith.truncf %30 : vector<8x8x8xf32> to vector<8x8x8xbf16>
    %42 = arith.truncf %35 : vector<8x8x8xf32> to vector<8x8x8xbf16>
    "tpu.trace_start"() <{level = 10 : i32, message = "bqd,bkd->bqk"}> : () -> ()
    %cst_19 = arith.constant dense<0.000000e+00> : vector<8x8x8xf32>
    %43 = tpu.matmul %41, %42, %cst_19 {dimension_numbers = #tpu.dot_dimension_numbers<[2], [2], [1], [1], [0, 0, 0, 1, 1, 1], [0], [0]>} : vector<8x8x8xbf16>, vector<8x8x8xbf16>, vector<8x8x8xf32> -> vector<8x8x8xf32>
    "tpu.trace_stop"() : () -> ()
    %cst_20 = arith.constant 0.353553385 : f32
    %44 = vector.broadcast %cst_20 : f32 to vector<8x8x8xf32>
    %45 = arith.mulf %43, %44 : vector<8x8x8xf32>
    %cst_21 = arith.constant dense<0xFF800000> : vector<8x8xf32>
    %46 = vector.multi_reduction <maximumf>, %45, %cst_21 [2] : vector<8x8x8xf32> to vector<8x8xf32>
    %47 = vector.shape_cast %46 : vector<8x8xf32> to vector<8x8x1xf32>
    %48 = vector.broadcast %47 : vector<8x8x1xf32> to vector<8x8x8xf32>
    %49 = arith.subf %45, %48 : vector<8x8x8xf32>
    %50 = math.exp %49 : vector<8x8x8xf32>
    %cst_22 = arith.constant dense<0.000000e+00> : vector<8x8xf32>
    %51 = vector.multi_reduction <add>, %50, %cst_22 [2] : vector<8x8x8xf32> to vector<8x8xf32>
    %52 = vector.shape_cast %51 : vector<8x8xf32> to vector<8x8x1xf32>
    %53 = vector.broadcast %52 : vector<8x8x1xf32> to vector<8x8x8xf32>
    %54 = arith.divf %50, %53 : vector<8x8x8xf32>
    %55 = arith.truncf %54 : vector<8x8x8xf32> to vector<8x8x8xbf16>
    %56 = arith.truncf %40 : vector<8x8x8xf32> to vector<8x8x8xbf16>
    "tpu.trace_start"() <{level = 10 : i32, message = "bqk,bkd->bqd"}> : () -> ()
    %cst_23 = arith.constant dense<0.000000e+00> : vector<8x8x8xf32>
    %57 = tpu.matmul %55, %56, %cst_23 {dimension_numbers = #tpu.dot_dimension_numbers<[2], [1], [1], [2], [0, 0, 0, 1, 1, 2], [0], [0]>} : vector<8x8x8xbf16>, vector<8x8x8xbf16>, vector<8x8x8xf32> -> vector<8x8x8xf32>
    "tpu.trace_stop"() : () -> ()
    %58 = vector.extract_strided_slice %57 {offsets = [0, 0, 0], sizes = [2, 8, 8], strides = [1, 1, 1]} : vector<8x8x8xf32> to vector<2x8x8xf32>
    %59 = vector.extract_strided_slice %57 {offsets = [2, 0, 0], sizes = [2, 8, 8], strides = [1, 1, 1]} : vector<8x8x8xf32> to vector<2x8x8xf32>
    %60 = vector.extract_strided_slice %57 {offsets = [4, 0, 0], sizes = [2, 8, 8], strides = [1, 1, 1]} : vector<8x8x8xf32> to vector<2x8x8xf32>
    %61 = vector.extract_strided_slice %57 {offsets = [6, 0, 0], sizes = [2, 8, 8], strides = [1, 1, 1]} : vector<8x8x8xf32> to vector<2x8x8xf32>
    %62 = tpu.concatenate %58, %59, %60, %61 in 2 : vector<2x8x8xf32>, vector<2x8x8xf32>, vector<2x8x8xf32>, vector<2x8x8xf32> -> vector<2x8x32xf32>
    %63 = vector.shape_cast %62 : vector<2x8x32xf32> to vector<16x32xf32>
    %64 = arith.truncf %63 : vector<16x32xf32> to vector<16x32xbf16>
    %cst_24 = arith.constant dense<0.000000e+00> : vector<16x32xf32>
    %65 = tpu.matmul %64, %4, %cst_24 {dimension_numbers = #tpu.dot_dimension_numbers<[1], [0], [0], [1], [0, 0, 1, 1], [], []>} : vector<16x32xbf16>, vector<32x32xbf16>, vector<16x32xf32> -> vector<16x32xf32>
    %66 = vector.broadcast %15 : vector<1x32xf32> to vector<16x32xf32>
    %67 = arith.addf %65, %66 : vector<16x32xf32>
    %68 = arith.addf %0, %67 : vector<16x32xf32>
    %cst_25 = arith.constant dense<0.000000e+00> : vector<16xf32>
    %69 = vector.multi_reduction <add>, %68, %cst_25 [1] : vector<16x32xf32> to vector<16xf32>
    %70 = vector.shape_cast %69 : vector<16xf32> to vector<16x1xf32>
    %cst_26 = arith.constant 3.200000e+01 : f32
    %71 = vector.broadcast %cst_26 : f32 to vector<16x1xf32>
    %72 = arith.divf %70, %71 : vector<16x1xf32>
    %73 = vector.broadcast %72 : vector<16x1xf32> to vector<16x32xf32>
    %74 = arith.subf %68, %73 : vector<16x32xf32>
    %75 = arith.mulf %74, %74 : vector<16x32xf32>
    %cst_27 = arith.constant dense<0.000000e+00> : vector<16xf32>
    %76 = vector.multi_reduction <add>, %75, %cst_27 [1] : vector<16x32xf32> to vector<16xf32>
    %77 = vector.shape_cast %76 : vector<16xf32> to vector<16x1xf32>
    %cst_28 = arith.constant 3.200000e+01 : f32
    %78 = vector.broadcast %cst_28 : f32 to vector<16x1xf32>
    %79 = arith.divf %77, %78 : vector<16x1xf32>
    %80 = vector.broadcast %72 : vector<16x1xf32> to vector<16x32xf32>
    %81 = arith.subf %68, %80 : vector<16x32xf32>
    %cst_29 = arith.constant 9.99999974E-6 : f32
    %82 = vector.broadcast %cst_29 : f32 to vector<16x1xf32>
    %83 = arith.addf %79, %82 : vector<16x1xf32>
    %84 = math.rsqrt %83 : vector<16x1xf32>
    %85 = vector.broadcast %84 : vector<16x1xf32> to vector<16x32xf32>
    %86 = arith.mulf %81, %85 : vector<16x32xf32>
    %87 = vector.broadcast %16 : vector<1x32xf32> to vector<16x32xf32>
    %88 = arith.mulf %86, %87 : vector<16x32xf32>
    %89 = vector.broadcast %17 : vector<1x32xf32> to vector<16x32xf32>
    %90 = arith.addf %88, %89 : vector<16x32xf32>
    %91 = arith.truncf %90 : vector<16x32xf32> to vector<16x32xbf16>
    %cst_30 = arith.constant dense<0.000000e+00> : vector<16x64xf32>
    %92 = tpu.matmul %91, %6, %cst_30 {dimension_numbers = #tpu.dot_dimension_numbers<[1], [0], [0], [1], [0, 0, 1, 1], [], []>} : vector<16x32xbf16>, vector<32x64xbf16>, vector<16x64xf32> -> vector<16x64xf32>
    %93 = vector.broadcast %14 : vector<1x64xf32> to vector<16x64xf32>
    %94 = arith.addf %92, %93 : vector<16x64xf32>
    %cst_31 = arith.constant 0.000000e+00 : f32
    %95 = vector.broadcast %cst_31 : f32 to vector<16x64xf32>
    %96 = arith.maximumf %94, %95 : vector<16x64xf32>
    %97 = arith.truncf %96 : vector<16x64xf32> to vector<16x64xbf16>
    %cst_32 = arith.constant dense<0.000000e+00> : vector<16x32xf32>
    %98 = tpu.matmul %97, %8, %cst_32 {dimension_numbers = #tpu.dot_dimension_numbers<[1], [0], [0], [1], [0, 0, 1, 1], [], []>} : vector<16x64xbf16>, vector<64x32xbf16>, vector<16x32xf32> -> vector<16x32xf32>
    %99 = vector.broadcast %18 : vector<1x32xf32> to vector<16x32xf32>
    %100 = arith.addf %98, %99 : vector<16x32xf32>
    %101 = arith.addf %90, %100 : vector<16x32xf32>
    %cst_33 = arith.constant dense<0.000000e+00> : vector<16xf32>
    %102 = vector.multi_reduction <add>, %101, %cst_33 [1] : vector<16x32xf32> to vector<16xf32>
    %103 = vector.shape_cast %102 : vector<16xf32> to vector<16x1xf32>
    %cst_34 = arith.constant 3.200000e+01 : f32
    %104 = vector.broadcast %cst_34 : f32 to vector<16x1xf32>
    %105 = arith.divf %103, %104 : vector<16x1xf32>
    %106 = vector.broadcast %105 : vector<16x1xf32> to vector<16x32xf32>
    %107 = arith.subf %101, %106 : vector<16x32xf32>
    %108 = arith.mulf %107, %107 : vector<16x32xf32>
    %cst_35 = arith.constant dense<0.000000e+00> : vector<16xf32>
    %109 = vector.multi_reduction <add>, %108, %cst_35 [1] : vector<16x32xf32> to vector<16xf32>
    %110 = vector.shape_cast %109 : vector<16xf32> to vector<16x1xf32>
    %cst_36 = arith.constant 3.200000e+01 : f32
    %111 = vector.broadcast %cst_36 : f32 to vector<16x1xf32>
    %112 = arith.divf %110, %111 : vector<16x1xf32>
    %113 = vector.broadcast %105 : vector<16x1xf32> to vector<16x32xf32>
    %114 = arith.subf %101, %113 : vector<16x32xf32>
    %cst_37 = arith.constant 9.99999974E-6 : f32
    %115 = vector.broadcast %cst_37 : f32 to vector<16x1xf32>
    %116 = arith.addf %112, %115 : vector<16x1xf32>
    %117 = math.rsqrt %116 : vector<16x1xf32>
    %118 = vector.broadcast %117 : vector<16x1xf32> to vector<16x32xf32>
    %119 = arith.mulf %114, %118 : vector<16x32xf32>
    %120 = vector.broadcast %19 : vector<1x32xf32> to vector<16x32xf32>
    %121 = arith.mulf %119, %120 : vector<16x32xf32>
    %122 = vector.broadcast %20 : vector<1x32xf32> to vector<16x32xf32>
    %123 = arith.addf %121, %122 : vector<16x32xf32>
    %c1 = arith.constant 1 : index
    %c0_38 = arith.constant 0 : index
    %c0_39 = arith.constant 0 : index
    %124 = vector.load %arg1[%c1, %c0_38, %c0_39] : memref<2x32x96xbf16, #tpu.memory_space<vmem>>, vector<1x32x96xbf16>
    %125 = vector.shape_cast %124 : vector<1x32x96xbf16> to vector<32x96xbf16>
    %c1_40 = arith.constant 1 : index
    %c0_41 = arith.constant 0 : index
    %c0_42 = arith.constant 0 : index
    %126 = vector.load %arg2[%c1_40, %c0_41, %c0_42] : memref<2x32x32xbf16, #tpu.memory_space<vmem>>, vector<1x32x32xbf16>
    %127 = vector.shape_cast %126 : vector<1x32x32xbf16> to vector<32x32xbf16>
    %c1_43 = arith.constant 1 : index
    %c0_44 = arith.constant 0 : index
    %c0_45 = arith.constant 0 : index
    %128 = vector.load %arg3[%c1_43, %c0_44, %c0_45] : memref<2x32x64xbf16, #tpu.memory_space<vmem>>, vector<1x32x64xbf16>
    %129 = vector.shape_cast %128 : vector<1x32x64xbf16> to vector<32x64xbf16>
    %c1_46 = arith.constant 1 : index
    %c0_47 = arith.constant 0 : index
    %c0_48 = arith.constant 0 : index
    %130 = vector.load %arg4[%c1_46, %c0_47, %c0_48] : memref<2x64x32xbf16, #tpu.memory_space<vmem>>, vector<1x64x32xbf16>
    %131 = vector.shape_cast %130 : vector<1x64x32xbf16> to vector<64x32xbf16>
    %c1_49 = arith.constant 1 : index
    %c0_50 = arith.constant 0 : index
    %c0_51 = arith.constant 0 : index
    %132 = vector.load %arg5[%c1_49, %c0_50, %c0_51] : memref<2x1x160xf32, #tpu.memory_space<vmem>>, vector<1x1x160xf32>
    %133 = vector.shape_cast %132 : vector<1x1x160xf32> to vector<1x160xf32>
    %c1_52 = arith.constant 1 : index
    %c0_53 = arith.constant 0 : index
    %c0_54 = arith.constant 0 : index
    %134 = vector.load %arg6[%c1_52, %c0_53, %c0_54] : memref<2x6x32xf32, #tpu.memory_space<vmem>>, vector<1x6x32xf32>
    %135 = vector.shape_cast %134 : vector<1x6x32xf32> to vector<6x32xf32>
    %136 = vector.extract_strided_slice %133 {offsets = [0, 0], sizes = [1, 96], strides = [1, 1]} : vector<1x160xf32> to vector<1x96xf32>
    %137 = vector.extract_strided_slice %133 {offsets = [0, 96], sizes = [1, 64], strides = [1, 1]} : vector<1x160xf32> to vector<1x64xf32>
    %138 = vector.extract_strided_slice %135 {offsets = [0, 0], sizes = [1, 32], strides = [1, 1]} : vector<6x32xf32> to vector<1x32xf32>
    %139 = vector.extract_strided_slice %135 {offsets = [1, 0], sizes = [1, 32], strides = [1, 1]} : vector<6x32xf32> to vector<1x32xf32>
    %140 = vector.extract_strided_slice %135 {offsets = [2, 0], sizes = [1, 32], strides = [1, 1]} : vector<6x32xf32> to vector<1x32xf32>
    %141 = vector.extract_strided_slice %135 {offsets = [3, 0], sizes = [1, 32], strides = [1, 1]} : vector<6x32xf32> to vector<1x32xf32>
    %142 = vector.extract_strided_slice %135 {offsets = [4, 0], sizes = [1, 32], strides = [1, 1]} : vector<6x32xf32> to vector<1x32xf32>
    %143 = vector.extract_strided_slice %135 {offsets = [5, 0], sizes = [1, 32], strides = [1, 1]} : vector<6x32xf32> to vector<1x32xf32>
    %144 = arith.truncf %123 : vector<16x32xf32> to vector<16x32xbf16>
    %cst_55 = arith.constant dense<0.000000e+00> : vector<16x96xf32>
    %145 = tpu.matmul %144, %125, %cst_55 {dimension_numbers = #tpu.dot_dimension_numbers<[1], [0], [0], [1], [0, 0, 1, 1], [], []>} : vector<16x32xbf16>, vector<32x96xbf16>, vector<16x96xf32> -> vector<16x96xf32>
    %146 = vector.broadcast %136 : vector<1x96xf32> to vector<16x96xf32>
    %147 = arith.addf %145, %146 : vector<16x96xf32>
    %148 = vector.shape_cast %147 : vector<16x96xf32> to vector<2x8x96xf32>
    %149 = vector.extract_strided_slice %148 {offsets = [0, 0, 0], sizes = [2, 8, 8], strides = [1, 1, 1]} : vector<2x8x96xf32> to vector<2x8x8xf32>
    %150 = vector.extract_strided_slice %148 {offsets = [0, 0, 8], sizes = [2, 8, 8], strides = [1, 1, 1]} : vector<2x8x96xf32> to vector<2x8x8xf32>
    %151 = vector.extract_strided_slice %148 {offsets = [0, 0, 16], sizes = [2, 8, 8], strides = [1, 1, 1]} : vector<2x8x96xf32> to vector<2x8x8xf32>
    %152 = vector.extract_strided_slice %148 {offsets = [0, 0, 24], sizes = [2, 8, 8], strides = [1, 1, 1]} : vector<2x8x96xf32> to vector<2x8x8xf32>
    %153 = tpu.concatenate %149, %150, %151, %152 in 0 : vector<2x8x8xf32>, vector<2x8x8xf32>, vector<2x8x8xf32>, vector<2x8x8xf32> -> vector<8x8x8xf32>
    %154 = vector.extract_strided_slice %148 {offsets = [0, 0, 32], sizes = [2, 8, 8], strides = [1, 1, 1]} : vector<2x8x96xf32> to vector<2x8x8xf32>
    %155 = vector.extract_strided_slice %148 {offsets = [0, 0, 40], sizes = [2, 8, 8], strides = [1, 1, 1]} : vector<2x8x96xf32> to vector<2x8x8xf32>
    %156 = vector.extract_strided_slice %148 {offsets = [0, 0, 48], sizes = [2, 8, 8], strides = [1, 1, 1]} : vector<2x8x96xf32> to vector<2x8x8xf32>
    %157 = vector.extract_strided_slice %148 {offsets = [0, 0, 56], sizes = [2, 8, 8], strides = [1, 1, 1]} : vector<2x8x96xf32> to vector<2x8x8xf32>
    %158 = tpu.concatenate %154, %155, %156, %157 in 0 : vector<2x8x8xf32>, vector<2x8x8xf32>, vector<2x8x8xf32>, vector<2x8x8xf32> -> vector<8x8x8xf32>
    %159 = vector.extract_strided_slice %148 {offsets = [0, 0, 64], sizes = [2, 8, 8], strides = [1, 1, 1]} : vector<2x8x96xf32> to vector<2x8x8xf32>
    %160 = vector.extract_strided_slice %148 {offsets = [0, 0, 72], sizes = [2, 8, 8], strides = [1, 1, 1]} : vector<2x8x96xf32> to vector<2x8x8xf32>
    %161 = vector.extract_strided_slice %148 {offsets = [0, 0, 80], sizes = [2, 8, 8], strides = [1, 1, 1]} : vector<2x8x96xf32> to vector<2x8x8xf32>
    %162 = vector.extract_strided_slice %148 {offsets = [0, 0, 88], sizes = [2, 8, 8], strides = [1, 1, 1]} : vector<2x8x96xf32> to vector<2x8x8xf32>
    %163 = tpu.concatenate %159, %160, %161, %162 in 0 : vector<2x8x8xf32>, vector<2x8x8xf32>, vector<2x8x8xf32>, vector<2x8x8xf32> -> vector<8x8x8xf32>
    %164 = arith.truncf %153 : vector<8x8x8xf32> to vector<8x8x8xbf16>
    %165 = arith.truncf %158 : vector<8x8x8xf32> to vector<8x8x8xbf16>
    "tpu.trace_start"() <{level = 10 : i32, message = "bqd,bkd->bqk"}> : () -> ()
    %cst_56 = arith.constant dense<0.000000e+00> : vector<8x8x8xf32>
    %166 = tpu.matmul %164, %165, %cst_56 {dimension_numbers = #tpu.dot_dimension_numbers<[2], [2], [1], [1], [0, 0, 0, 1, 1, 1], [0], [0]>} : vector<8x8x8xbf16>, vector<8x8x8xbf16>, vector<8x8x8xf32> -> vector<8x8x8xf32>
    "tpu.trace_stop"() : () -> ()
    %cst_57 = arith.constant 0.353553385 : f32
    %167 = vector.broadcast %cst_57 : f32 to vector<8x8x8xf32>
    %168 = arith.mulf %166, %167 : vector<8x8x8xf32>
    %cst_58 = arith.constant dense<0xFF800000> : vector<8x8xf32>
    %169 = vector.multi_reduction <maximumf>, %168, %cst_58 [2] : vector<8x8x8xf32> to vector<8x8xf32>
    %170 = vector.shape_cast %169 : vector<8x8xf32> to vector<8x8x1xf32>
    %171 = vector.broadcast %170 : vector<8x8x1xf32> to vector<8x8x8xf32>
    %172 = arith.subf %168, %171 : vector<8x8x8xf32>
    %173 = math.exp %172 : vector<8x8x8xf32>
    %cst_59 = arith.constant dense<0.000000e+00> : vector<8x8xf32>
    %174 = vector.multi_reduction <add>, %173, %cst_59 [2] : vector<8x8x8xf32> to vector<8x8xf32>
    %175 = vector.shape_cast %174 : vector<8x8xf32> to vector<8x8x1xf32>
    %176 = vector.broadcast %175 : vector<8x8x1xf32> to vector<8x8x8xf32>
    %177 = arith.divf %173, %176 : vector<8x8x8xf32>
    %178 = arith.truncf %177 : vector<8x8x8xf32> to vector<8x8x8xbf16>
    %179 = arith.truncf %163 : vector<8x8x8xf32> to vector<8x8x8xbf16>
    "tpu.trace_start"() <{level = 10 : i32, message = "bqk,bkd->bqd"}> : () -> ()
    %cst_60 = arith.constant dense<0.000000e+00> : vector<8x8x8xf32>
    %180 = tpu.matmul %178, %179, %cst_60 {dimension_numbers = #tpu.dot_dimension_numbers<[2], [1], [1], [2], [0, 0, 0, 1, 1, 2], [0], [0]>} : vector<8x8x8xbf16>, vector<8x8x8xbf16>, vector<8x8x8xf32> -> vector<8x8x8xf32>
    "tpu.trace_stop"() : () -> ()
    %181 = vector.extract_strided_slice %180 {offsets = [0, 0, 0], sizes = [2, 8, 8], strides = [1, 1, 1]} : vector<8x8x8xf32> to vector<2x8x8xf32>
    %182 = vector.extract_strided_slice %180 {offsets = [2, 0, 0], sizes = [2, 8, 8], strides = [1, 1, 1]} : vector<8x8x8xf32> to vector<2x8x8xf32>
    %183 = vector.extract_strided_slice %180 {offsets = [4, 0, 0], sizes = [2, 8, 8], strides = [1, 1, 1]} : vector<8x8x8xf32> to vector<2x8x8xf32>
    %184 = vector.extract_strided_slice %180 {offsets = [6, 0, 0], sizes = [2, 8, 8], strides = [1, 1, 1]} : vector<8x8x8xf32> to vector<2x8x8xf32>
    %185 = tpu.concatenate %181, %182, %183, %184 in 2 : vector<2x8x8xf32>, vector<2x8x8xf32>, vector<2x8x8xf32>, vector<2x8x8xf32> -> vector<2x8x32xf32>
    %186 = vector.shape_cast %185 : vector<2x8x32xf32> to vector<16x32xf32>
    %187 = arith.truncf %186 : vector<16x32xf32> to vector<16x32xbf16>
    %cst_61 = arith.constant dense<0.000000e+00> : vector<16x32xf32>
    %188 = tpu.matmul %187, %127, %cst_61 {dimension_numbers = #tpu.dot_dimension_numbers<[1], [0], [0], [1], [0, 0, 1, 1], [], []>} : vector<16x32xbf16>, vector<32x32xbf16>, vector<16x32xf32> -> vector<16x32xf32>
    %189 = vector.broadcast %138 : vector<1x32xf32> to vector<16x32xf32>
    %190 = arith.addf %188, %189 : vector<16x32xf32>
    %191 = arith.addf %123, %190 : vector<16x32xf32>
    %cst_62 = arith.constant dense<0.000000e+00> : vector<16xf32>
    %192 = vector.multi_reduction <add>, %191, %cst_62 [1] : vector<16x32xf32> to vector<16xf32>
    %193 = vector.shape_cast %192 : vector<16xf32> to vector<16x1xf32>
    %cst_63 = arith.constant 3.200000e+01 : f32
    %194 = vector.broadcast %cst_63 : f32 to vector<16x1xf32>
    %195 = arith.divf %193, %194 : vector<16x1xf32>
    %196 = vector.broadcast %195 : vector<16x1xf32> to vector<16x32xf32>
    %197 = arith.subf %191, %196 : vector<16x32xf32>
    %198 = arith.mulf %197, %197 : vector<16x32xf32>
    %cst_64 = arith.constant dense<0.000000e+00> : vector<16xf32>
    %199 = vector.multi_reduction <add>, %198, %cst_64 [1] : vector<16x32xf32> to vector<16xf32>
    %200 = vector.shape_cast %199 : vector<16xf32> to vector<16x1xf32>
    %cst_65 = arith.constant 3.200000e+01 : f32
    %201 = vector.broadcast %cst_65 : f32 to vector<16x1xf32>
    %202 = arith.divf %200, %201 : vector<16x1xf32>
    %203 = vector.broadcast %195 : vector<16x1xf32> to vector<16x32xf32>
    %204 = arith.subf %191, %203 : vector<16x32xf32>
    %cst_66 = arith.constant 9.99999974E-6 : f32
    %205 = vector.broadcast %cst_66 : f32 to vector<16x1xf32>
    %206 = arith.addf %202, %205 : vector<16x1xf32>
    %207 = math.rsqrt %206 : vector<16x1xf32>
    %208 = vector.broadcast %207 : vector<16x1xf32> to vector<16x32xf32>
    %209 = arith.mulf %204, %208 : vector<16x32xf32>
    %210 = vector.broadcast %139 : vector<1x32xf32> to vector<16x32xf32>
    %211 = arith.mulf %209, %210 : vector<16x32xf32>
    %212 = vector.broadcast %140 : vector<1x32xf32> to vector<16x32xf32>
    %213 = arith.addf %211, %212 : vector<16x32xf32>
    %214 = arith.truncf %213 : vector<16x32xf32> to vector<16x32xbf16>
    %cst_67 = arith.constant dense<0.000000e+00> : vector<16x64xf32>
    %215 = tpu.matmul %214, %129, %cst_67 {dimension_numbers = #tpu.dot_dimension_numbers<[1], [0], [0], [1], [0, 0, 1, 1], [], []>} : vector<16x32xbf16>, vector<32x64xbf16>, vector<16x64xf32> -> vector<16x64xf32>
    %216 = vector.broadcast %137 : vector<1x64xf32> to vector<16x64xf32>
    %217 = arith.addf %215, %216 : vector<16x64xf32>
    %cst_68 = arith.constant 0.000000e+00 : f32
    %218 = vector.broadcast %cst_68 : f32 to vector<16x64xf32>
    %219 = arith.maximumf %217, %218 : vector<16x64xf32>
    %220 = arith.truncf %219 : vector<16x64xf32> to vector<16x64xbf16>
    %cst_69 = arith.constant dense<0.000000e+00> : vector<16x32xf32>
    %221 = tpu.matmul %220, %131, %cst_69 {dimension_numbers = #tpu.dot_dimension_numbers<[1], [0], [0], [1], [0, 0, 1, 1], [], []>} : vector<16x64xbf16>, vector<64x32xbf16>, vector<16x32xf32> -> vector<16x32xf32>
    %222 = vector.broadcast %141 : vector<1x32xf32> to vector<16x32xf32>
    %223 = arith.addf %221, %222 : vector<16x32xf32>
    %224 = arith.addf %213, %223 : vector<16x32xf32>
    %cst_70 = arith.constant dense<0.000000e+00> : vector<16xf32>
    %225 = vector.multi_reduction <add>, %224, %cst_70 [1] : vector<16x32xf32> to vector<16xf32>
    %226 = vector.shape_cast %225 : vector<16xf32> to vector<16x1xf32>
    %cst_71 = arith.constant 3.200000e+01 : f32
    %227 = vector.broadcast %cst_71 : f32 to vector<16x1xf32>
    %228 = arith.divf %226, %227 : vector<16x1xf32>
    %229 = vector.broadcast %228 : vector<16x1xf32> to vector<16x32xf32>
    %230 = arith.subf %224, %229 : vector<16x32xf32>
    %231 = arith.mulf %230, %230 : vector<16x32xf32>
    %cst_72 = arith.constant dense<0.000000e+00> : vector<16xf32>
    %232 = vector.multi_reduction <add>, %231, %cst_72 [1] : vector<16x32xf32> to vector<16xf32>
    %233 = vector.shape_cast %232 : vector<16xf32> to vector<16x1xf32>
    %cst_73 = arith.constant 3.200000e+01 : f32
    %234 = vector.broadcast %cst_73 : f32 to vector<16x1xf32>
    %235 = arith.divf %233, %234 : vector<16x1xf32>
    %236 = vector.broadcast %228 : vector<16x1xf32> to vector<16x32xf32>
    %237 = arith.subf %224, %236 : vector<16x32xf32>
    %cst_74 = arith.constant 9.99999974E-6 : f32
    %238 = vector.broadcast %cst_74 : f32 to vector<16x1xf32>
    %239 = arith.addf %235, %238 : vector<16x1xf32>
    %240 = math.rsqrt %239 : vector<16x1xf32>
    %241 = vector.broadcast %240 : vector<16x1xf32> to vector<16x32xf32>
    %242 = arith.mulf %237, %241 : vector<16x32xf32>
    %243 = vector.broadcast %142 : vector<1x32xf32> to vector<16x32xf32>
    %244 = arith.mulf %242, %243 : vector<16x32xf32>
    %245 = vector.broadcast %143 : vector<1x32xf32> to vector<16x32xf32>
    %246 = arith.addf %244, %245 : vector<16x32xf32>
    %c0_75 = arith.constant 0 : index
    %c0_76 = arith.constant 0 : index
    %247 = vector.load %arg7[%c0_75, %c0_76] : memref<2x32xf32, #tpu.memory_space<vmem>>, vector<2x32xf32>
    %248 = vector.extract_strided_slice %247 {offsets = [0, 0], sizes = [1, 32], strides = [1, 1]} : vector<2x32xf32> to vector<1x32xf32>
    %249 = vector.extract_strided_slice %247 {offsets = [1, 0], sizes = [1, 32], strides = [1, 1]} : vector<2x32xf32> to vector<1x32xf32>
    %cst_77 = arith.constant dense<0.000000e+00> : vector<16xf32>
    %250 = vector.multi_reduction <add>, %246, %cst_77 [1] : vector<16x32xf32> to vector<16xf32>
    %251 = vector.shape_cast %250 : vector<16xf32> to vector<16x1xf32>
    %cst_78 = arith.constant 3.200000e+01 : f32
    %252 = vector.broadcast %cst_78 : f32 to vector<16x1xf32>
    %253 = arith.divf %251, %252 : vector<16x1xf32>
    %254 = vector.broadcast %253 : vector<16x1xf32> to vector<16x32xf32>
    %255 = arith.subf %246, %254 : vector<16x32xf32>
    %256 = arith.mulf %255, %255 : vector<16x32xf32>
    %cst_79 = arith.constant dense<0.000000e+00> : vector<16xf32>
    %257 = vector.multi_reduction <add>, %256, %cst_79 [1] : vector<16x32xf32> to vector<16xf32>
    %258 = vector.shape_cast %257 : vector<16xf32> to vector<16x1xf32>
    %cst_80 = arith.constant 3.200000e+01 : f32
    %259 = vector.broadcast %cst_80 : f32 to vector<16x1xf32>
    %260 = arith.divf %258, %259 : vector<16x1xf32>
    %261 = vector.broadcast %253 : vector<16x1xf32> to vector<16x32xf32>
    %262 = arith.subf %246, %261 : vector<16x32xf32>
    %cst_81 = arith.constant 9.99999974E-6 : f32
    %263 = vector.broadcast %cst_81 : f32 to vector<16x1xf32>
    %264 = arith.addf %260, %263 : vector<16x1xf32>
    %265 = math.rsqrt %264 : vector<16x1xf32>
    %266 = vector.broadcast %265 : vector<16x1xf32> to vector<16x32xf32>
    %267 = arith.mulf %262, %266 : vector<16x32xf32>
    %268 = vector.broadcast %248 : vector<1x32xf32> to vector<16x32xf32>
    %269 = arith.mulf %267, %268 : vector<16x32xf32>
    %270 = vector.broadcast %249 : vector<1x32xf32> to vector<16x32xf32>
    %271 = arith.addf %269, %270 : vector<16x32xf32>
    %c0_82 = arith.constant 0 : index
    %c0_83 = arith.constant 0 : index
    %272 = vector.load %arg8[%c0_82, %c0_83] : memref<16x32xf32, #tpu.memory_space<vmem>>, vector<16x32xf32>
    tpu.vector_store %arg8[%c0_82, %c0_83], %271 {strides = array<i32>} : memref<16x32xf32, #tpu.memory_space<vmem>>, vector<16x32xf32>,
    return
  }
}

</mosaic_0001>

<bundles_post_ra>
// kernel: tpu_custom_call.1
= control target key start
LH: loop header
LB: loop body
LE: loop exit
PB: predicated region body
PF: predicated region fallthrough
CT: control target
= control target key end

     0   :  { %13 = vsyncpa [#allocation3], 0  ;;  %s4090_s0 = inlined_call_operand.hbm [shape: f32[16,32], index: 0, kind: input, shape index: {}]   ;;  %s4091_s1 = inlined_call_operand.vmem [shape: bf16[2,32,96], index: 1, kind: input, shape index: {}]   ;;  %s4092_s2 = inlined_call_operand.vmem [shape: bf16[2,32,32], index: 2, kind: input, shape index: {}]   ;;  %s4093_s3 = inlined_call_operand.vmem [shape: bf16[2,32,64], index: 3, kind: input, shape index: {}]   ;;  %s4094_s4 = inlined_call_operand.vmem [shape: bf16[2,64,32], index: 4, kind: input, shape index: {}]   ;;  %s4095_s5 = inlined_call_operand.vmem [shape: f32[2,1,160], index: 5, kind: input, shape index: {}]   ;;  %s4096_s6 = inlined_call_operand.vmem [shape: f32[2,6,32], index: 6, kind: input, shape index: {}]   ;;  %s4097_s7 = inlined_call_operand.vmem [shape: f32[2,32], index: 7, kind: input, shape index: {}]   ;;  %s4098_s8 = inlined_call_operand.hbm [shape: f32[16,32], index: 8, kind: output, shape index: {}]  }
   0x1   :  { %14 = vsyncpa [#allocation4], 0  ;;  %s3394_s27 = smov [#allocation2]   ;;  %s3346_s9 = scalar_lea.hbm %s4090_s0, 256 }
   0x2   :  { %s20_s28 = sshll.u32 %s3394_s27, 4  ;;  %p3347_p0 = scmp.ne.s32.totalorder %s4090_s0, %s3346_s9  ;;  %s21_s28 = int_to_ptr.vmem [resolvable:$true] %s20_s28 }
   0x3   :  { %p3350_p1 = scmp.lt.u32.totalorder %s3346_s9, %s4090_s0 }
   0x5   :  { %p3352_p2 = pnand %p3350_p1, %p3347_p0 }
   0x7   :  { %3355 = shalt.err (!%p3352_p2)
}
   0x8   :  { %s3356_s14 = scalar_lea.vmem %s21_s28, 256  ;;  %p3361_p4 = scmp.lt.s32.totalorder %s21_s28, %s21_s28 }
   0x9   :  { %p3357_p3 = scmp.ne.s32.totalorder %s21_s28, %s3356_s14  ;;  %p3362_p5 = scmp.lt.s32.totalorder %s3356_s14, %s3356_s14 }
   0xb   :  { %p3363_p6 = por %p3362_p5, %p3361_p4 }
   0xd   :  { %p3364_p7 = pnand %p3363_p6, %p3357_p3 }
   0xf   :  { %3367 = shalt.err (!%p3364_p7)
}
  0x10   :  { %s3395_s15 = smov 128   ;;  %s3396_s16 = smov 8  }
  0x11   :  { %26 = dma.hbm_to_vmem [thread:$0]  %s4090_s0, 256, %s21_s28, [#allocation3], %s3395_s15, %s3395_s15, %s3396_s16  }
  0x12   :  { %3390 = dma.done.wait [#allocation3], 256  }
  0x13   :  { %3391 = vsyncadd [#allocation3], 4294967040  ;;  %v3397_v0 = vmov 0.0   ;;  %vm3398_vm0 = vmmov 0   ;;  %v3242_v1 = vld [vmem:[%s4091_s1] sm:$0xff]   ;;  %v3243_v2 = vld [vmem:[%s4091_s1 + $0x8] sm:$0xff]   ;;  %v71_v6 = vlaneseq }
  0x14   :  { %2904 = vmatprep.subr.bf16.mxu1 %v3397_v0  ;;  %2908 = vmatprep.mubr.msk.bf16.mxu1 %vm3398_vm0, %v3397_v0  ;;  %v3480_v3 = vld [vmem:[#allocation2] sm:$0xff]  ;;  %v3482_v4 = vld [vmem:[#allocation2 + $0x8] sm:$0xff]  ;;  %vm88_vm1 = vcmask 261120   ;;  %s3399_s24 = smov 104   ;;  %s3400_s25 = smov 120   ;;  %vm164_vm2 = vcmask 64512  }
  0x15   :  { %2918 = vmatprep.subr.bf16.mxu0 %v3397_v0  ;;  %2920 = vmatprep.mubr.msk.bf16.mxu0 %vm3398_vm0, %v3397_v0  ;;  %v69_v5 = vpack.c.bf16 %v3482_v4, %v3480_v3  ;;  %v3491_v7 = vshrl.u32 %v71_v6, 7  ;;  %v3499_v9 = vld [vmem:[%s4095_s5] sm:$0x3]  ;;  %s3401_s26 = smov 96   ;;  %s3402_s27 = smov 112   ;;  %vm663_vm3 = vcmask 1043456  }
  0x16   :  { %2905 = vmatpush3.bf16.msra.mxu1 %v3242_v1  ;;  %s3403_s28 = smov 64   ;;  %s3404_s11 = smov 16   ;;  %vm1069_vm4 = vcmask 130048   ;;  %vm1072_vm5 = vcmask 195584   ;;  %vm1275_vm6 = vcmask 523264  }
  0x17   :  { %2906 = vmatprep.subr.bf16.mxu1 %v3397_v0  ;;  %v3494_v8 = vsub.s32 0, %v3491_v7  ;;  %s3405_s12 = smov 24   ;;  %s3406_s22 = smov 32  }
  0x18   :  { %s3407_s13 = smov [#allocation5]  }
  0x19   :  { %v3503_v10 = vrot.slane %v3499_v9, %v3494_v8  ;;  %s2718_s14 = sshll.u32 %s3407_s13, 4  ;;  %s2719_s14 = int_to_ptr.vmem [resolvable:$true] %s2718_s14 }
  0x1a   :  { %2907 = vmatpush3.bf16.msra.mxu1 %v3243_v2  ;;  %p3373_p9 = scmp.lt.s32.totalorder %s2719_s14, %s2719_s14 }
  0x1b   :  { %2912 = vmatprep.subr.bf16.mxu1 %v3397_v0 }
  0x1d   :  { %2909 = vmatmul.mubr.msk.bf16.vlgmr.msra.gmra.mrb[0].mxu1 %vm88_vm1, %v69_v5 }
  0x1e   :  { %2914 = vmatprep.mubr.msk.bf16.mxu1 %vm3398_vm0, %v3397_v0 }
  0xf0   :  { %v126_v11 = vpop.f32.mrb[0].mxu1 }
  0xf1   :  { %v2910_v12 = vpop.f32.mrb[1].mxu1  ;;  %v127_v14 = vadd.f32 %v126_v11, %v3503_v10 }
  0xf2   :  { %v129_v13 = vpop.f32.mrb[2].mxu1 }
  0xf3   :  { %v130_v15 = vadd.f32 %v129_v13, %v3503_v10  ;;  %v2911_v16 = vpop.f32.mrb[3].mxu1  ;;  %v153_v18 = vpack.c.bf16 %v127_v14, %v127_v14 }
  0xf5   :  { %v3192_v17 = vpack.i.bf16 %v130_v15, %v127_v14  ;;  %v154_v19 = vpack.c.bf16 %v130_v15, %v130_v15 }
  0xf7   :  { %3193 = vrot.lane.b32.xlu1 %v3192_v17, %s3399_s24  ;;  %3183 = vrot.lane.b32.xlu0 %v3192_v17, %s3400_s25 }
  0xfb   :  { %162 = vrot.lane.b32.xlu1 %v153_v18, %s3401_s26  ;;  %3188 = vrot.lane.b32.xlu0 %v3192_v17, %s3402_s27 }
  0xff   :  { %212 = vrot.lane.b32.xlu0 %v154_v19, %s3401_s26 }
 0x169   :  { %v3194_v20 = vpop.permute.xlu1 %3193  ;;  %v3184_v21 = vpop.permute.xlu0 %3183 }
 0x16a   :  { %v3186_v22 = vunpack.i.h.bf16 %v3184_v21  ;;  %v3185_v23 = vunpack.i.l.bf16 %v3184_v21  ;;  %v3195_v31 = vunpack.i.l.bf16 %v3194_v20  ;;  %v3196_v34 = vunpack.i.h.bf16 %v3194_v20 }
 0x16c   :  { %v3512_v24 = vpack.c.bf16 %v3185_v23, %v3185_v23  ;;  %v3514_v25 = vpack.c.bf16 %v3186_v22, %v3186_v22  ;;  %v3531_v37 = vpack.c.bf16 %v3195_v31, %v3195_v31  ;;  %v3534_v38 = vpack.c.bf16 %v3196_v34, %v3196_v34 }
 0x16d   :  { %v163_v26 = vpop.permute.xlu1 %162  ;;  %v3189_v27 = vpop.permute.xlu0 %3188 }
 0x16e   :  { %v169_v28 = vsel %vm164_vm2, %v163_v26, 0  ;;  %v3191_v29 = vunpack.i.h.bf16 %v3189_v27  ;;  %v3190_v30 = vunpack.i.l.bf16 %v3189_v27  ;;  %261 = vrot.lane.b32.xlu1 %v3512_v24, %s3401_s26  ;;  %310 = vrot.lane.b32.xlu0 %v3514_v25, %s3401_s26 }
 0x16f   :  { %2913 = vmatpush3.bf16.xpose.msra.mxu1 %v169_v28 }
 0x170   :  { %v3521_v32 = vpack.c.bf16 %v3190_v30, %v3190_v30  ;;  %v3523_v33 = vpack.c.bf16 %v3191_v29, %v3191_v29  ;;  %2924 = vmatprep.subr.bf16.mxu1 %v3397_v0 }
 0x171   :  { %v213_v35 = vpop.permute.xlu0 %212 }
 0x172   :  { %359 = vrot.lane.b32.xlu1 %v3521_v32, %s3401_s26  ;;  %408 = vrot.lane.b32.xlu0 %v3523_v33, %s3401_s26  ;;  %v218_v36 = vsel %vm164_vm2, %v213_v35, 0 }
 0x173   :  { %2919 = vmatpush3.bf16.xpose.msra.mxu0 %v218_v36 }
 0x174   :  { %2930 = vmatprep.subr.bf16.mxu0 %v3397_v0 }
 0x176   :  { %2915 = vmatmul.mubr.msk.bf16.vlgmr.msra.gmra.mrb[4].mxu1 %vm164_vm2, %v153_v18  ;;  %457 = vrot.lane.b32.xlu1 %v3531_v37, %s3401_s26 }
 0x177   :  { %506 = vrot.lane.b32.xlu0 %v3534_v38, %s3401_s26  ;;  %2926 = vmatprep.mubr.msk.bf16.mxu1 %vm3398_vm0, %v3397_v0 }
 0x17a   :  { %707 = vrot.lane.b32.xlu1 %v154_v19, %s3403_s28  ;;  %2921 = vmatmul.mubr.msk.bf16.vlgmr.msra.gmra.mrb[0].mxu0 %vm164_vm2, %v154_v19 }
 0x17b   :  { %658 = vrot.lane.b32.xlu0 %v153_v18, %s3403_s28  ;;  %2932 = vmatprep.mubr.msk.bf16.mxu0 %vm3398_vm0, %v3397_v0 }
 0x1e0   :  { %v262_v39 = vpop.permute.xlu1 %261  ;;  %v311_v40 = vpop.permute.xlu0 %310 }
 0x1e1   :  { %v267_v41 = vsel %vm164_vm2, %v262_v39, 0  ;;  %v316_v42 = vsel %vm164_vm2, %v311_v40, 0 }
 0x1e2   :  { %2925 = vmatpush3.bf16.xpose.msra.mxu1 %v267_v41  ;;  %2931 = vmatpush3.bf16.xpose.msra.mxu0 %v316_v42 }
 0x1e3   :  { %2936 = vmatprep.subr.bf16.mxu1 %v3397_v0  ;;  %2942 = vmatprep.subr.bf16.mxu0 %v3397_v0 }
 0x1e4   :  { %v360_v43 = vpop.permute.xlu1 %359  ;;  %v409_v44 = vpop.permute.xlu0 %408 }
 0x1e5   :  { %v365_v45 = vsel %vm164_vm2, %v360_v43, 0  ;;  %v414_v46 = vsel %vm164_vm2, %v409_v44, 0 }
 0x1e8   :  { %v458_v47 = vpop.permute.xlu1 %457 }
 0x1e9   :  { %2927 = vmatmul.mubr.msk.bf16.vlgmr.msra.gmra.mrb[8].mxu1 %vm164_vm2, %v3512_v24  ;;  %2933 = vmatmul.mubr.msk.bf16.vlgmr.msra.gmra.mrb[4].mxu0 %vm164_vm2, %v3514_v25  ;;  %v507_v48 = vpop.permute.xlu0 %506  ;;  %v463_v49 = vsel %vm164_vm2, %v458_v47, 0 }
 0x1ea   :  { %2937 = vmatpush3.bf16.xpose.msra.mxu1 %v365_v45  ;;  %2943 = vmatpush3.bf16.xpose.msra.mxu0 %v414_v46  ;;  %v512_v50 = vsel %vm164_vm2, %v507_v48, 0 }
 0x1eb   :  { %2938 = vmatprep.mubr.msk.bf16.mxu1 %vm3398_vm0, %v3397_v0  ;;  %2944 = vmatprep.mubr.msk.bf16.mxu0 %vm3398_vm0, %v3397_v0 }
 0x1ec   :  { %2948 = vmatprep.subr.bf16.mxu1 %v3397_v0  ;;  %2954 = vmatprep.subr.bf16.mxu0 %v3397_v0  ;;  %v708_v51 = vpop.permute.xlu1 %707 }
 0x1ed   :  { %v659_v52 = vpop.permute.xlu0 %658  ;;  %v713_v53 = vsel %vm663_vm3, %v708_v51, 0 }
 0x1ee   :  { %v665_v54 = vsel %vm663_vm3, %v659_v52, 0 }
 0x1f1   :  { %2939 = vmatmul.mubr.msk.bf16.vlgmr.msra.gmra.mrb[12].mxu1 %vm164_vm2, %v3521_v32  ;;  %2945 = vmatmul.mubr.msk.bf16.vlgmr.msra.gmra.mrb[8].mxu0 %vm164_vm2, %v3523_v33 }
 0x1f2   :  { %2949 = vmatpush3.bf16.xpose.msra.mxu1 %v463_v49  ;;  %2955 = vmatpush3.bf16.xpose.msra.mxu0 %v512_v50 }
 0x1f3   :  { %2950 = vmatprep.mubr.msk.bf16.mxu1 %vm3398_vm0, %v3397_v0  ;;  %2956 = vmatprep.mubr.msk.bf16.mxu0 %vm3398_vm0, %v3397_v0 }
 0x1f4   :  { %2960 = vmatprep.subr.bf16.mxu1 %v3397_v0  ;;  %2966 = vmatprep.subr.bf16.mxu0 %v3397_v0 }
 0x1f9   :  { %2951 = vmatmul.mubr.msk.bf16.vlgmr.msra.gmra.mrb[16].mxu1 %vm164_vm2, %v3531_v37  ;;  %2957 = vmatmul.mubr.msk.bf16.vlgmr.msra.gmra.mrb[12].mxu0 %vm164_vm2, %v3534_v38 }
 0x1fa   :  { %2961 = vmatpush3.bf16.msra.mxu1 %v665_v54  ;;  %2967 = vmatpush3.bf16.msra.mxu0 %v713_v53 }
 0x1fb   :  { %2962 = vmatprep.mubr.msk.bf16.mxu1 %vm3398_vm0, %v3397_v0  ;;  %2968 = vmatprep.mubr.msk.bf16.mxu0 %vm3398_vm0, %v3397_v0 }
 0x1fc   :  { %2972 = vmatprep.subr.bf16.mxu1 %v3397_v0  ;;  %2978 = vmatprep.subr.bf16.mxu0 %v3397_v0 }
 0x249   :  { %v205_v55 = vpop.f32.mrb[4].mxu1 }
 0x24a   :  { %v554_v56 = vmul.f32 0.35355338, %v205_v55  ;;  %v2916_v57 = vpop.f32.mrb[5].mxu1 }
 0x24b   :  { %v208_v58 = vpop.f32.mrb[6].mxu1 }
 0x24c   :  { %v2917_v59 = vpop.f32.mrb[7].mxu1  ;;  %v562_v60 = vsel %vm164_vm2, %v554_v56, -inf }
 0x24d   :  { %v254_v61 = vpop.f32.mrb[0].mxu0  ;;  %563 = vmax.xlane.f32.xlu1 %v562_v60 }
 0x24e   :  { %v555_v62 = vmul.f32 0.35355338, %v254_v61  ;;  %v2922_v63 = vpop.f32.mrb[1].mxu0 }
 0x24f   :  { %v257_v1 = vpop.f32.mrb[2].mxu0 }
 0x250   :  { %v2923_v2 = vpop.f32.mrb[3].mxu0  ;;  %v565_v5 = vsel %vm164_vm2, %v555_v62, -inf }
 0x251   :  { %566 = vmax.xlane.f32.xlu0 %v565_v5 }
 0x2bc   :  { %v303_v6 = vpop.f32.mrb[8].mxu1  ;;  %v352_v11 = vpop.f32.mrb[4].mxu0 }
 0x2bd   :  { %v556_v12 = vmul.f32 0.35355338, %v303_v6  ;;  %v557_v13 = vmul.f32 0.35355338, %v352_v11  ;;  %v2928_v14 = vpop.f32.mrb[9].mxu1  ;;  %v2934_v15 = vpop.f32.mrb[5].mxu0 }
 0x2be   :  { %v306_v16 = vpop.f32.mrb[10].mxu1  ;;  %v355_v17 = vpop.f32.mrb[6].mxu0 }
 0x2bf   :  { %v2929_v18 = vpop.f32.mrb[11].mxu1  ;;  %v2935_v19 = vpop.f32.mrb[7].mxu0  ;;  %v571_v20 = vsel %vm164_vm2, %v557_v13, -inf  ;;  %v568_v21 = vsel %vm164_vm2, %v556_v12, -inf }
 0x2c0   :  { %572 = vmax.xlane.f32.xlu1 %v571_v20  ;;  %569 = vmax.xlane.f32.xlu0 %v568_v21 }
 0x2c4   :  { %v401_v22 = vpop.f32.mrb[12].mxu1  ;;  %v450_v23 = vpop.f32.mrb[8].mxu0 }
 0x2c5   :  { %v3592_v26 = vmul.f32 0.35355338, %v401_v22  ;;  %v559_v27 = vmul.f32 0.35355338, %v450_v23  ;;  %v2940_v28 = vpop.f32.mrb[13].mxu1  ;;  %v2946_v29 = vpop.f32.mrb[9].mxu0 }
 0x2c6   :  { %v404_v30 = vpop.f32.mrb[14].mxu1  ;;  %v453_v31 = vpop.f32.mrb[10].mxu0 }
 0x2c7   :  { %v2941_v34 = vpop.f32.mrb[15].mxu1  ;;  %v2947_v35 = vpop.f32.mrb[11].mxu0  ;;  %v577_v36 = vsel %vm164_vm2, %v559_v27, -inf  ;;  %v574_v39 = vsel %vm164_vm2, %v3592_v26, -inf }
 0x2c8   :  { %578 = vmax.xlane.f32.xlu1 %v577_v36  ;;  %575 = vmax.xlane.f32.xlu0 %v574_v39 }
 0x2cc   :  { %v499_v40 = vpop.f32.mrb[16].mxu1  ;;  %v548_v41 = vpop.f32.mrb[12].mxu0 }
 0x2cd   :  { %v3597_v42 = vmul.f32 0.35355338, %v499_v40  ;;  %v561_v43 = vmul.f32 0.35355338, %v548_v41  ;;  %v2952_v44 = vpop.f32.mrb[17].mxu1  ;;  %v2958_v45 = vpop.f32.mrb[13].mxu0 }
 0x2ce   :  { %v502_v46 = vpop.f32.mrb[18].mxu1  ;;  %v551_v47 = vpop.f32.mrb[14].mxu0 }
 0x2cf   :  { %v2953_v48 = vpop.f32.mrb[19].mxu1  ;;  %v2959_v49 = vpop.f32.mrb[15].mxu0  ;;  %v583_v50 = vsel %vm164_vm2, %v561_v43, -inf  ;;  %v580_v51 = vsel %vm164_vm2, %v3597_v42, -inf }
 0x2d0   :  { %584 = vmax.xlane.f32.xlu1 %v583_v50  ;;  %581 = vmax.xlane.f32.xlu0 %v580_v51 }
 0x2da   :  { %v564_v52 = vpop.xlane.xlu1 %563 }
 0x2db   :  { %v586_v54 = vsub.f32 %v554_v56, %v564_v52 }
 0x2dd   :  { %v594_v57 = vmul.f32 1.442695, %v586_v54 }
 0x2de   :  { %v567_v53 = vpop.xlane.xlu0 %566 }
 0x2df   :  { %v587_v55 = vsub.f32 %v555_v62, %v567_v53  ;;  %3262 = vpow2.f32 %v594_v57 }
 0x2e1   :  { %755 = vrot.lane.b32.xlu1 %v3512_v24, %s3403_s28  ;;  %v596_v58 = vmul.f32 1.442695, %v587_v55 }
 0x2e3   :  { %3264 = vpow2.f32 %v596_v58 }
 0x2e6   :  { %803 = vrot.lane.b32.xlu0 %v3514_v25, %s3403_s28 }
 0x2e9   :  { %v3263_v59 = vpop.eup %3262 }
 0x2ea   :  { %v610_v63 = vsel %vm164_vm2, %v3263_v59, 0.0 }
 0x2ed   :  { %v3265_v60 = vpop.eup %3264 }
 0x2ee   :  { %v613_v61 = vsel %vm164_vm2, %v3265_v60, 0.0 }
 0x305   :  { %614 = vadd.xlane.f32.xlu1 %v613_v61  ;;  %611 = vadd.xlane.f32.xlu0 %v610_v63 }
 0x316   :  { %851 = vrot.lane.b32.xlu1 %v3521_v32, %s3403_s28 }
 0x34d   :  { %v573_v24 = vpop.xlane.xlu1 %572  ;;  %v570_v25 = vpop.xlane.xlu0 %569 }
 0x34e   :  { %v589_v1 = vsub.f32 %v557_v13, %v573_v24  ;;  %v588_v56 = vsub.f32 %v556_v12, %v570_v25 }
 0x350   :  { %v600_v62 = vmul.f32 1.442695, %v589_v1  ;;  %v598_v2 = vmul.f32 1.442695, %v588_v56 }
 0x352   :  { %3266 = vpow2.f32 %v600_v62 }
 0x353   :  { %3268 = vpow2.f32 %v598_v2 }
 0x355   :  { %v579_v5 = vpop.xlane.xlu1 %578  ;;  %v576_v22 = vpop.xlane.xlu0 %575 }
 0x356   :  { %v591_v6 = vsub.f32 %v559_v27, %v579_v5  ;;  %v590_v23 = vsub.f32 %v3592_v26, %v576_v22 }
 0x358   :  { %v604_v11 = vmul.f32 1.442695, %v591_v6  ;;  %v602_v28 = vmul.f32 1.442695, %v590_v23 }
 0x35a   :  { %3270 = vpow2.f32 %v604_v11 }
 0x35c   :  { %v3610_v14 = vpop.eup %3266 }
 0x35d   :  { %v3612_v15 = vpop.eup %3268  ;;  %v585_v16 = vpop.xlane.xlu1 %584  ;;  %v619_v32 = vsel %vm164_vm2, %v3610_v14, 0.0 }
 0x35e   :  { %v593_v17 = vsub.f32 %v561_v43, %v585_v16  ;;  %620 = vadd.xlane.f32.xlu1 %v619_v32  ;;  %v616_v12 = vsel %vm164_vm2, %v3612_v15, 0.0  ;;  %v582_v27 = vpop.xlane.xlu0 %581 }
 0x35f   :  { %617 = vadd.xlane.f32.xlu0 %v616_v12  ;;  %v592_v29 = vsub.f32 %v3597_v42, %v582_v27 }
 0x360   :  { %v608_v13 = vmul.f32 1.442695, %v593_v17 }
 0x361   :  { %v606_v30 = vmul.f32 1.442695, %v592_v29  ;;  %v756_v31 = vpop.permute.xlu1 %755 }
 0x362   :  { %3272 = vpow2.f32 %v608_v13  ;;  %v804_v34 = vpop.permute.xlu0 %803  ;;  %v761_v47 = vsel %vm663_vm3, %v756_v31, 0 }
 0x363   :  { %3274 = vpow2.f32 %v602_v28  ;;  %v809_v46 = vsel %vm663_vm3, %v804_v34, 0 }
 0x364   :  { %v3618_v18 = vpop.eup %3270  ;;  %3276 = vpow2.f32 %v606_v30 }
 0x365   :  { %v625_v19 = vsel %vm164_vm2, %v3618_v18, 0.0 }
 0x366   :  { %626 = vadd.xlane.f32.xlu1 %v625_v19 }
 0x36c   :  { %v3622_v20 = vpop.eup %3272 }
 0x36d   :  { %v631_v21 = vsel %vm164_vm2, %v3622_v20, 0.0  ;;  %v3632_v35 = vpop.eup %3274 }
 0x36e   :  { %632 = vadd.xlane.f32.xlu1 %v631_v21  ;;  %v3636_v26 = vpop.eup %3276 }
 0x375   :  { %899 = vrot.lane.b32.xlu0 %v3523_v33, %s3403_s28  ;;  %v622_v33 = vsel %vm164_vm2, %v3632_v35, 0.0 }
 0x37f   :  { %947 = vrot.lane.b32.xlu1 %v3531_v37, %s3403_s28  ;;  %v628_v37 = vsel %vm164_vm2, %v3636_v26, 0.0 }
 0x392   :  { %v615_v36 = vpop.xlane.xlu1 %614  ;;  %v612_v39 = vpop.xlane.xlu0 %611 }
 0x393   :  { %3278 = vrcp.f32 %v615_v36 }
 0x394   :  { %3280 = vrcp.f32 %v612_v39  ;;  %623 = vadd.xlane.f32.xlu0 %v622_v33 }
 0x396   :  { %v852_v48 = vpop.permute.xlu1 %851 }
 0x398   :  { %629 = vadd.xlane.f32.xlu0 %v628_v37 }
 0x39d   :  { %v3279_v40 = vpop.eup %3278 }
 0x39e   :  { %v3281_v41 = vpop.eup %3280  ;;  %v637_v42 = vmul.f32 %v3279_v40, %v3265_v60 }
 0x39f   :  { %v635_v43 = vmul.f32 %v3281_v41, %v3263_v59 }
 0x3a0   :  { %v651_v44 = vpack.c.bf16 %v637_v42, %v637_v42 }
 0x3a1   :  { %v650_v45 = vpack.c.bf16 %v635_v43, %v635_v43 }
 0x3a2   :  { %2969 = vmatmul.mubr.msk.bf16.vlgmr.msra.gmra.mrb[16].mxu0 %vm164_vm2, %v651_v44  ;;  %v3244_v44 = vld [vmem:[%s4092_s2] sm:$0xff]  }
 0x3a3   :  { %2963 = vmatmul.mubr.msk.bf16.vlgmr.msra.gmra.mrb[20].mxu1 %vm164_vm2, %v650_v45  ;;  %2979 = vmatpush3.bf16.msra.mxu0 %v809_v46 }
 0x3a4   :  { %2973 = vmatpush3.bf16.msra.mxu1 %v761_v47  ;;  %2974 = vmatprep.mubr.msk.bf16.mxu1 %vm3398_vm0, %v3397_v0 }
 0x3a5   :  { %2980 = vmatprep.mubr.msk.bf16.mxu0 %vm3398_vm0, %v3397_v0  ;;  %2984 = vmatprep.subr.bf16.mxu1 %v3397_v0 }
 0x3a6   :  { %2990 = vmatprep.subr.bf16.mxu0 %v3397_v0 }
 0x3ae   :  { %995 = vrot.lane.b32.xlu0 %v3534_v38, %s3403_s28  ;;  %v857_v38 = vsel %vm663_vm3, %v852_v48, 0  ;;  %v3245_v48 = vld [vmem:[%s4092_s2 + $0x8] sm:$0xff]  }
 0x3eb   :  { %v621_v49 = vpop.xlane.xlu1 %620 }
 0x3ec   :  { %3282 = vrcp.f32 %v621_v49  ;;  %v618_v50 = vpop.xlane.xlu0 %617 }
 0x3ed   :  { %3284 = vrcp.f32 %v618_v50 }
 0x3f0   :  { %v900_v57 = vpop.permute.xlu0 %899 }
 0x3f1   :  { %v905_v60 = vsel %vm663_vm3, %v900_v57, 0 }
 0x3f3   :  { %v627_v51 = vpop.xlane.xlu1 %626 }
 0x3f4   :  { %3286 = vrcp.f32 %v627_v51 }
 0x3f6   :  { %v3283_v52 = vpop.eup %3282 }
 0x3f7   :  { %v3285_v53 = vpop.eup %3284  ;;  %v641_v54 = vmul.f32 %v3283_v52, %v3610_v14 }
 0x3f8   :  { %v639_v55 = vmul.f32 %v3285_v53, %v3612_v15 }
 0x3f9   :  { %v653_v58 = vpack.c.bf16 %v641_v54, %v641_v54 }
 0x3fa   :  { %v652_v59 = vpack.c.bf16 %v639_v55, %v639_v55 }
 0x3fb   :  { %2981 = vmatmul.mubr.msk.bf16.vlgmr.msra.gmra.mrb[20].mxu0 %vm164_vm2, %v653_v58  ;;  %v633_v25 = vpop.xlane.xlu1 %632 }
 0x3fc   :  { %2975 = vmatmul.mubr.msk.bf16.vlgmr.msra.gmra.mrb[24].mxu1 %vm164_vm2, %v652_v59  ;;  %2991 = vmatpush3.bf16.msra.mxu0 %v905_v60  ;;  %3288 = vrcp.f32 %v633_v25 }
 0x3fd   :  { %2985 = vmatpush3.bf16.msra.mxu1 %v857_v38  ;;  %2992 = vmatprep.mubr.msk.bf16.mxu0 %vm3398_vm0, %v3397_v0 }
 0x3fe   :  { %v3287_v61 = vpop.eup %3286  ;;  %3002 = vmatprep.subr.bf16.mxu0 %v3397_v0  ;;  %2986 = vmatprep.mubr.msk.bf16.mxu1 %vm3398_vm0, %v3397_v0 }
 0x3ff   :  { %v645_v63 = vmul.f32 %v3287_v61, %v3618_v18  ;;  %2996 = vmatprep.subr.bf16.mxu1 %v3397_v0  ;;  %v948_v16 = vpop.permute.xlu1 %947 }
 0x400   :  { %v953_v12 = vsel %vm663_vm3, %v948_v16, 0 }
 0x401   :  { %v655_v24 = vpack.c.bf16 %v645_v63, %v645_v63 }
 0x403   :  { %2993 = vmatmul.mubr.msk.bf16.vlgmr.msra.gmra.mrb[24].mxu0 %vm164_vm2, %v655_v24 }
 0x404   :  { %3004 = vmatprep.mubr.msk.bf16.mxu0 %vm3398_vm0, %v3397_v0 }
 0x406   :  { %v3289_v56 = vpop.eup %3288 }
 0x407   :  { %v649_v2 = vmul.f32 %v3289_v56, %v3622_v20 }
 0x409   :  { %v657_v14 = vpack.c.bf16 %v649_v2, %v649_v2 }
 0x421   :  { %v624_v1 = vpop.xlane.xlu0 %623 }
 0x422   :  { %3290 = vrcp.f32 %v624_v1 }
 0x425   :  { %v630_v62 = vpop.xlane.xlu0 %629 }
 0x426   :  { %3292 = vrcp.f32 %v630_v62 }
 0x429   :  { %v996_v5 = vpop.permute.xlu0 %995 }
 0x42a   :  { %v1001_v6 = vsel %vm663_vm3, %v996_v5, 0 }
 0x42b   :  { %3003 = vmatpush3.bf16.msra.mxu0 %v1001_v6 }
 0x42c   :  { %v3291_v11 = vpop.eup %3290  ;;  %3016 = vmatprep.subr.bf16.mxu0 %v3397_v0 }
 0x42d   :  { %v643_v15 = vmul.f32 %v3291_v11, %v3632_v35 }
 0x42e   :  { %3005 = vmatmul.mubr.msk.bf16.vlgmr.msra.gmra.mrb[28].mxu0 %vm164_vm2, %v657_v14 }
 0x42f   :  { %v654_v32 = vpack.c.bf16 %v643_v15, %v643_v15  ;;  %3020 = vmatprep.mubr.msk.bf16.mxu0 %vm3398_vm0, %v3397_v0 }
 0x430   :  { %v3293_v17 = vpop.eup %3292 }
 0x431   :  { %2987 = vmatmul.mubr.msk.bf16.vlgmr.msra.gmra.mrb[28].mxu1 %vm164_vm2, %v654_v32  ;;  %v647_v13 = vmul.f32 %v3293_v17, %v3636_v26  ;;  %v3707_v17 = vld [vmem:[%s4096_s6] sm:$0x3f] }
 0x432   :  { %2997 = vmatpush3.bf16.msra.mxu1 %v953_v12  ;;  %2998 = vmatprep.mubr.msk.bf16.mxu1 %vm3398_vm0, %v3397_v0  ;;  %v1079_v12 = vrot.slane %v3707_v17, %v3494_v8 }
 0x433   :  { %3008 = vmatprep.subr.bf16.mxu1 %v3397_v0  ;;  %v656_v18 = vpack.c.bf16 %v647_v13, %v647_v13 }
 0x439   :  { %2999 = vmatmul.mubr.msk.bf16.vlgmr.msra.gmra.mrb[32].mxu1 %vm164_vm2, %v656_v18 }
 0x43a   :  { %3012 = vmatprep.mubr.msk.bf16.mxu1 %vm3398_vm0, %v3397_v0  ;;  %3009 = vmatpush3.bf16.msra.mxu1 %v3244_v44  ;;  %v3249_v44 = vld [vmem:[%s4094_s4 + $0x8] sm:$0xff]  }
 0x43b   :  { %3010 = vmatprep.subr.bf16.mxu1 %v3397_v0 }
 0x43e   :  { %3011 = vmatpush3.bf16.msra.mxu1 %v3245_v48 }
 0x43f   :  { %3024 = vmatprep.subr.bf16.mxu1 %v3397_v0 }
 0x475   :  { %v749_v19 = vpop.f32.mrb[16].mxu0 }
 0x476   :  { %v701_v20 = vpop.f32.mrb[20].mxu1  ;;  %v2970_v21 = vpop.f32.mrb[17].mxu0 }
 0x477   :  { %v2964_v22 = vpop.f32.mrb[21].mxu1  ;;  %v752_v23 = vpop.f32.mrb[18].mxu0 }
 0x478   :  { %v704_v27 = vpop.f32.mrb[22].mxu1  ;;  %v2971_v28 = vpop.f32.mrb[19].mxu0 }
 0x479   :  { %v2965_v29 = vpop.f32.mrb[23].mxu1 }
 0x4ce   :  { %v845_v30 = vpop.f32.mrb[20].mxu0 }
 0x4cf   :  { %v797_v31 = vpop.f32.mrb[24].mxu1  ;;  %v2982_v34 = vpop.f32.mrb[21].mxu0 }
 0x4d0   :  { %v3197_v35 = vpack.i.bf16 %v845_v30, %v797_v31  ;;  %v2976_v36 = vpop.f32.mrb[25].mxu1  ;;  %v848_v39 = vpop.f32.mrb[22].mxu0 }
 0x4d1   :  { %v800_v33 = vpop.f32.mrb[26].mxu1  ;;  %v2983_v26 = vpop.f32.mrb[23].mxu0 }
 0x4d2   :  { %3198 = vrot.lane.b32.xlu1 %v3197_v35, %s3396_s16  ;;  %v2977_v37 = vpop.f32.mrb[27].mxu1 }
 0x4d6   :  { %v941_v40 = vpop.f32.mrb[24].mxu0 }
 0x4d7   :  { %v2994_v41 = vpop.f32.mrb[25].mxu0 }
 0x4d8   :  { %v944_v42 = vpop.f32.mrb[26].mxu0  ;;  %v3725_v41 = vsub.s32 1, %v3491_v7 }
 0x4d9   :  { %v2995_v43 = vpop.f32.mrb[27].mxu0 }
 0x4da   :  { %v1181_v42 = vrot.slane %v3499_v9, %v3725_v41  ;;  %v3248_v43 = vld [vmem:[%s4094_s4] sm:$0xff]  }
 0x501   :  { %v1037_v45 = vpop.f32.mrb[28].mxu0 }
 0x502   :  { %v3006_v46 = vpop.f32.mrb[29].mxu0 }
 0x503   :  { %v1040_v47 = vpop.f32.mrb[30].mxu0 }
 0x504   :  { %v893_v49 = vpop.f32.mrb[28].mxu1  ;;  %v3007_v50 = vpop.f32.mrb[31].mxu0 }
 0x505   :  { %v3202_v51 = vpack.i.bf16 %v941_v40, %v893_v49  ;;  %v2988_v52 = vpop.f32.mrb[29].mxu1  ;;  %v3247_v40 = vld [vmem:[%s4093_s3 + $0x8] sm:$0xff]   ;;  %v1168_v50 = vrot.slane %v3707_v17, %v3725_v41 }
 0x506   :  { %v896_v53 = vpop.f32.mrb[30].mxu1  ;;  %v1173_v52 = vsub.s32 2, %v3491_v7 }
 0x507   :  { %3203 = vrot.lane.b32.xlu0 %v3202_v51, %s3404_s11  ;;  %v2989_v54 = vpop.f32.mrb[31].mxu1 }
 0x50c   :  { %v989_v55 = vpop.f32.mrb[32].mxu1 }
 0x50d   :  { %v3207_v57 = vpack.i.bf16 %v1037_v45, %v989_v55  ;;  %v3000_v58 = vpop.f32.mrb[33].mxu1 }
 0x50e   :  { %v992_v59 = vpop.f32.mrb[34].mxu1 }
 0x50f   :  { %3208 = vrot.lane.b32.xlu1 %v3207_v57, %s3405_s12  ;;  %v3001_v60 = vpop.f32.mrb[35].mxu1  ;;  %v1174_v57 = vrot.slane %v3707_v17, %v1173_v52 }
 0x544   :  { %v3199_v38 = vpop.permute.xlu1 %3198 }
 0x545   :  { %v3201_v63 = vunpack.i.h.bf16 %v3199_v38  ;;  %v3200_v24 = vunpack.i.l.bf16 %v3199_v38 }
 0x547   :  { %v1068_v62 = vsel %vm164_vm2, %v749_v19, %v3201_v63  ;;  %v1067_v2 = vsel %vm164_vm2, %v701_v20, %v3200_v24  ;;  %v3251_v63 = vld [vmem:[%s4094_s4 + $0x18] sm:$0xff]  }
 0x579   :  { %v3204_v61 = vpop.permute.xlu0 %3203 }
 0x57a   :  { %v3206_v25 = vunpack.i.h.bf16 %v3204_v61  ;;  %v3205_v1 = vunpack.i.l.bf16 %v3204_v61  ;;  %v3250_v61 = vld [vmem:[%s4094_s4 + $0x10] sm:$0xff]  }
 0x57c   :  { %v1071_v11 = vsel %vm1069_vm4, %v1068_v62, %v3206_v25  ;;  %v1070_v14 = vsel %vm1069_vm4, %v1067_v2, %v3205_v1 }
 0x581   :  { %v3209_v56 = vpop.permute.xlu1 %3208 }
 0x582   :  { %v3211_v5 = vunpack.i.h.bf16 %v3209_v56  ;;  %v3210_v6 = vunpack.i.l.bf16 %v3209_v56 }
 0x584   :  { %v1074_v15 = vsel %vm1072_vm5, %v1071_v11, %v3211_v5  ;;  %v1073_v16 = vsel %vm1072_vm5, %v1070_v14, %v3210_v6 }
 0x585   :  { %v1075_v32 = vpack.c.bf16 %v1074_v15, %v1073_v16 }
 0x587   :  { %3013 = vmatmul.mubr.msk.bf16.vlgmr.msra.gmra.mrb[36].mxu1 %vm88_vm1, %v1075_v32  ;;  %v1249_v32 = vsub.s32 3, %v3491_v7 }
 0x588   :  { %3032 = vmatprep.mubr.msk.bf16.mxu1 %vm3398_vm0, %v3397_v0  ;;  %3025 = vmatpush3.bf16.msra.mxu1 %v3248_v43 }
 0x589   :  { %3026 = vmatprep.subr.bf16.mxu1 %v3397_v0 }
 0x58c   :  { %3027 = vmatpush3.bf16.msra.mxu1 %v3249_v44 }
 0x58d   :  { %3028 = vmatprep.subr.bf16.mxu1 %v3397_v0 }
 0x590   :  { %3029 = vmatpush3.bf16.msra.mxu1 %v3250_v61 }
 0x591   :  { %3030 = vmatprep.subr.bf16.mxu1 %v3397_v0 }
 0x594   :  { %3031 = vmatpush3.bf16.msra.mxu1 %v3251_v63 }
 0x595   :  { %3050 = vmatprep.subr.bf16.mxu1 %v3397_v0 }
 0x65a   :  { %v1129_v13 = vpop.f32.mrb[36].mxu1 }
 0x65b   :  { %v1130_v18 = vadd.f32 %v1129_v13, %v1079_v12  ;;  %v3014_v19 = vpop.f32.mrb[37].mxu1 }
 0x65c   :  { %v1132_v20 = vpop.f32.mrb[38].mxu1 }
 0x65d   :  { %v1133_v21 = vadd.f32 %v1132_v20, %v1079_v12  ;;  %v3015_v22 = vpop.f32.mrb[39].mxu1  ;;  %v1136_v23 = vadd.f32 %v1130_v18, %v3480_v3  ;;  %v1250_v12 = vrot.slane %v3707_v17, %v1249_v32 }
 0x65f   :  { %v1138_v27 = vsel %vm88_vm1, %v1136_v23, 0.0  ;;  %v1137_v28 = vadd.f32 %v1133_v21, %v3482_v4  ;;  %v3246_v4 = vld [vmem:[%s4093_s3] sm:$0xff]  }
 0x660   :  { %1139 = vadd.xlane.f32.xlu0 %v1138_v27  ;;  %3017 = vmatpush3.bf16.msra.mxu0 %v3246_v4  ;;  %v3252_v4 = vld [vmem:[%s4091_s1 + $0x10] sm:$0xff]  }
 0x661   :  { %v1141_v29 = vsel %vm88_vm1, %v1137_v28, 0.0  ;;  %3018 = vmatprep.subr.bf16.mxu0 %v3397_v0 }
 0x662   :  { %1142 = vadd.xlane.f32.xlu1 %v1141_v29 }
 0x664   :  { %3019 = vmatpush3.bf16.msra.mxu0 %v3247_v40  ;;  %v3253_v40 = vld [vmem:[%s4091_s1 + $0x18] sm:$0xff]  }
 0x665   :  { %3036 = vmatprep.subr.bf16.mxu0 %v3397_v0 }
 0x673   :  { %1194 = vrot.lane.b32.xlu1 %v3503_v10, %s3406_s22 }
 0x6ed   :  { %v1140_v30 = vpop.xlane.xlu0 %1139 }
 0x6ee   :  { %v1145_v31 = vmul.f32 0.03125, %v1140_v30 }
 0x6ef   :  { %v1143_v34 = vpop.xlane.xlu1 %1142 }
 0x6f0   :  { %v1147_v35 = vsub.f32 %v1136_v23, %v1145_v31  ;;  %v1146_v36 = vmul.f32 0.03125, %v1143_v34 }
 0x6f2   :  { %v1148_v39 = vsub.f32 %v1137_v28, %v1146_v36  ;;  %v1149_v33 = vmul.f32 %v1147_v35, %v1147_v35 }
 0x6f3   :  { %v1195_v25 = vpop.permute.xlu1 %1194 }
 0x6f4   :  { %v1151_v26 = vsel %vm88_vm1, %v1149_v33, 0.0  ;;  %v1150_v37 = vmul.f32 %v1148_v39, %v1148_v39 }
 0x6f5   :  { %1152 = vadd.xlane.f32.xlu0 %v1151_v26 }
 0x6f6   :  { %v1154_v3 = vsel %vm88_vm1, %v1150_v37, 0.0 }
 0x6f9   :  { %1155 = vadd.xlane.f32.xlu0 %v1154_v3 }
 0x70f   :  { %1196 = vrot.lane.b32.xlu0 %v1181_v42, %s3406_s22 }
 0x782   :  { %v1153_v9 = vpop.xlane.xlu0 %1152 }
 0x783   :  { %v1157_v45 = vmul.f32 0.03125, %v1153_v9 }
 0x785   :  { %v1159_v46 = vadd.f32 1e-05, %v1157_v45 }
 0x786   :  { %v1156_v47 = vpop.xlane.xlu0 %1155 }
 0x787   :  { %3294 = vrsqrt.f32 %v1159_v46  ;;  %v1158_v48 = vmul.f32 0.03125, %v1156_v47  ;;  %v1350_v47 = vsub.s32 4, %v3491_v7 }
 0x789   :  { %v1160_v49 = vadd.f32 1e-05, %v1158_v48  ;;  %v1351_v48 = vrot.slane %v3707_v17, %v1350_v47 }
 0x78a   :  { %v1197_v24 = vpop.permute.xlu0 %1196 }
 0x78b   :  { %3296 = vrsqrt.f32 %v1160_v49  ;;  %v1198_v1 = vsel %vm88_vm1, %v1195_v25, %v1197_v24  ;;  %v1356_v49 = vsub.s32 5, %v3491_v7 }
 0x791   :  { %v3295_v10 = vpop.eup %3294 }
 0x792   :  { %v1163_v51 = vmul.f32 %v3295_v10, %v1147_v35 }
 0x794   :  { %v1169_v54 = vmul.f32 %v1168_v50, %v1163_v51 }
 0x795   :  { %v3297_v53 = vpop.eup %3296 }
 0x796   :  { %v1164_v55 = vmul.f32 %v3297_v53, %v1148_v39  ;;  %v1175_v59 = vadd.f32 %v1174_v57, %v1169_v54 }
 0x798   :  { %v1170_v58 = vmul.f32 %v1168_v50, %v1164_v55  ;;  %v1357_v55 = vrot.slane %v3707_v17, %v1356_v49 }
 0x79a   :  { %v1176_v60 = vadd.f32 %v1174_v57, %v1170_v58 }
 0x79c   :  { %v1177_v38 = vpack.c.bf16 %v1176_v60, %v1175_v59 }
 0x79e   :  { %3021 = vmatmul.mubr.msk.bf16.vlgmr.msra.gmra.mrb[32].mxu0 %vm88_vm1, %v1177_v38  ;;  %v3798_v38 = vld [vmem:[%s4095_s5 + $0x2] sm:$0x3] }
 0x79f   :  { %3040 = vmatprep.mubr.msk.bf16.mxu0 %vm3398_vm0, %v3397_v0  ;;  %3037 = vmatpush3.bf16.msra.mxu0 %v3252_v4  ;;  %v3802_v17 = vrot.slane %v3798_v38, %v3494_v8 }
 0x7a0   :  { %3038 = vmatprep.subr.bf16.mxu0 %v3397_v0 }
 0x7a3   :  { %3039 = vmatpush3.bf16.msra.mxu0 %v3253_v40 }
 0x7a4   :  { %3044 = vmatprep.subr.bf16.mxu0 %v3397_v0 }
 0x871   :  { %v1237_v56 = vpop.f32.mrb[32].mxu0 }
 0x872   :  { %v1238_v62 = vadd.f32 %v1237_v56, %v1198_v1  ;;  %v3022_v2 = vpop.f32.mrb[33].mxu0 }
 0x873   :  { %v1240_v5 = vpop.f32.mrb[34].mxu0 }
 0x874   :  { %v1241_v6 = vadd.f32 %v1240_v5, %v1198_v1  ;;  %v3023_v11 = vpop.f32.mrb[35].mxu0  ;;  %v1244_v14 = vmax.f32 %v1238_v62, 0.0 }
 0x876   :  { %v1245_v15 = vmax.f32 %v1241_v6, 0.0 }
 0x878   :  { %v1246_v16 = vpack.c.bf16 %v1245_v15, %v1244_v14 }
 0x87a   :  { %3033 = vmatmul.mubr.msk.bf16.vlgmr.msra.gmra.mrb[40].mxu1 %vm1275_vm6, %v1246_v16 }
 0x87b   :  { %3052 = vmatprep.mubr.msk.bf16.mxu1 %vm3398_vm0, %v3397_v0 }
 0x94d   :  { %v1313_v13 = vpop.f32.mrb[40].mxu1 }
 0x94e   :  { %v1314_v18 = vadd.f32 %v1313_v13, %v1250_v12  ;;  %v3034_v19 = vpop.f32.mrb[41].mxu1 }
 0x94f   :  { %v1316_v20 = vpop.f32.mrb[42].mxu1 }
 0x950   :  { %v1317_v21 = vadd.f32 %v1316_v20, %v1250_v12  ;;  %v3035_v22 = vpop.f32.mrb[43].mxu1  ;;  %v1320_v23 = vadd.f32 %v1314_v18, %v1175_v59 }
 0x952   :  { %v1322_v27 = vsel %vm88_vm1, %v1320_v23, 0.0  ;;  %v1321_v28 = vadd.f32 %v1317_v21, %v1176_v60 }
 0x953   :  { %1323 = vadd.xlane.f32.xlu1 %v1322_v27 }
 0x954   :  { %v1325_v29 = vsel %vm88_vm1, %v1321_v28, 0.0 }
 0x955   :  { %1326 = vadd.xlane.f32.xlu0 %v1325_v29 }
 0x9e0   :  { %v1324_v30 = vpop.xlane.xlu1 %1323 }
 0x9e1   :  { %v1328_v31 = vmul.f32 0.03125, %v1324_v30 }
 0x9e2   :  { %v1327_v34 = vpop.xlane.xlu0 %1326 }
 0x9e3   :  { %v1330_v35 = vsub.f32 %v1320_v23, %v1328_v31  ;;  %v1329_v36 = vmul.f32 0.03125, %v1327_v34 }
 0x9e5   :  { %v1331_v39 = vsub.f32 %v1321_v28, %v1329_v36  ;;  %v1332_v33 = vmul.f32 %v1330_v35, %v1330_v35 }
 0x9e7   :  { %v1334_v26 = vsel %vm88_vm1, %v1332_v33, 0.0  ;;  %v1333_v37 = vmul.f32 %v1331_v39, %v1331_v39 }
 0x9e8   :  { %1335 = vadd.xlane.f32.xlu1 %v1334_v26 }
 0x9e9   :  { %v1337_v3 = vsel %vm88_vm1, %v1333_v37, 0.0 }
 0x9ea   :  { %1338 = vadd.xlane.f32.xlu0 %v1337_v3 }
 0xa75   :  { %v1336_v42 = vpop.xlane.xlu1 %1335 }
 0xa76   :  { %v1340_v43 = vmul.f32 0.03125, %v1336_v42 }
 0xa77   :  { %v1339_v44 = vpop.xlane.xlu0 %1338 }
 0xa78   :  { %v1342_v9 = vadd.f32 1e-05, %v1340_v43  ;;  %v1341_v45 = vmul.f32 0.03125, %v1339_v44 }
 0xa7a   :  { %3298 = vrsqrt.f32 %v1342_v9  ;;  %v1343_v46 = vadd.f32 1e-05, %v1341_v45 }
 0xa7c   :  { %3300 = vrsqrt.f32 %v1343_v46 }
 0xa84   :  { %v3299_v10 = vpop.eup %3298 }
 0xa85   :  { %v1346_v50 = vmul.f32 %v3299_v10, %v1330_v35 }
 0xa86   :  { %v3301_v51 = vpop.eup %3300 }
 0xa87   :  { %v1352_v53 = vmul.f32 %v1351_v48, %v1346_v50  ;;  %v1347_v54 = vmul.f32 %v3301_v51, %v1331_v39 }
 0xa89   :  { %v1353_v57 = vmul.f32 %v1351_v48, %v1347_v54  ;;  %v3786_v58 = vadd.f32 %v1357_v55, %v1352_v53 }
 0xa8b   :  { %v3788_v59 = vadd.f32 %v1357_v55, %v1353_v57 }
 0xa8d   :  { %v1388_v60 = vpack.c.bf16 %v3788_v59, %v3786_v58 }
 0xa8f   :  { %3041 = vmatmul.mubr.msk.bf16.vlgmr.msra.gmra.mrb[36].mxu0 %vm88_vm1, %v1388_v60 }
 0xa90   :  { %3046 = vmatprep.mubr.msk.bf16.mxu0 %vm3398_vm0, %v3397_v0 }
 0xb62   :  { %v1444_v61 = vpop.f32.mrb[36].mxu0 }
 0xb63   :  { %v3042_v63 = vpop.f32.mrb[37].mxu0  ;;  %v1445_v25 = vadd.f32 %v1444_v61, %v3802_v17 }
 0xb64   :  { %v1447_v24 = vpop.f32.mrb[38].mxu0 }
 0xb65   :  { %v1448_v1 = vadd.f32 %v1447_v24, %v3802_v17  ;;  %v3043_v56 = vpop.f32.mrb[39].mxu0  ;;  %v1471_v5 = vpack.c.bf16 %v1445_v25, %v1445_v25 }
 0xb67   :  { %v3217_v62 = vpack.i.bf16 %v1448_v1, %v1445_v25  ;;  %v1472_v2 = vpack.c.bf16 %v1448_v1, %v1448_v1 }
 0xb69   :  { %3218 = vrot.lane.b32.xlu0 %v3217_v62, %s3402_s27  ;;  %3213 = vrot.lane.b32.xlu1 %v3217_v62, %s3400_s25 }
 0xb6d   :  { %3223 = vrot.lane.b32.xlu1 %v3217_v62, %s3399_s24  ;;  %1529 = vrot.lane.b32.xlu0 %v1472_v2, %s3401_s26 }
 0xb71   :  { %1480 = vrot.lane.b32.xlu1 %v1471_v5, %s3401_s26 }
 0xbdb   :  { %v3219_v6 = vpop.permute.xlu0 %3218  ;;  %v3214_v11 = vpop.permute.xlu1 %3213 }
 0xbdc   :  { %v3216_v14 = vunpack.i.h.bf16 %v3214_v11  ;;  %v3215_v15 = vunpack.i.l.bf16 %v3214_v11  ;;  %v3221_v16 = vunpack.i.h.bf16 %v3219_v6  ;;  %v3220_v12 = vunpack.i.l.bf16 %v3219_v6 }
 0xbde   :  { %v3811_v13 = vpack.c.bf16 %v3216_v14, %v3216_v14  ;;  %v3813_v18 = vpack.c.bf16 %v3215_v15, %v3215_v15  ;;  %v3820_v22 = vpack.c.bf16 %v3221_v16, %v3221_v16  ;;  %v3822_v23 = vpack.c.bf16 %v3220_v12, %v3220_v12 }
 0xbdf   :  { %v3224_v19 = vpop.permute.xlu1 %3223  ;;  %v1530_v20 = vpop.permute.xlu0 %1529 }
 0xbe0   :  { %v1535_v21 = vsel %vm164_vm2, %v1530_v20, 0  ;;  %1578 = vrot.lane.b32.xlu1 %v3813_v18, %s3401_s26  ;;  %1627 = vrot.lane.b32.xlu0 %v3811_v13, %s3401_s26  ;;  %v3226_v27 = vunpack.i.h.bf16 %v3224_v19  ;;  %v3225_v28 = vunpack.i.l.bf16 %v3224_v19 }
 0xbe1   :  { %3051 = vmatpush3.bf16.xpose.msra.mxu1 %v1535_v21 }
 0xbe2   :  { %3062 = vmatprep.subr.bf16.mxu1 %v3397_v0  ;;  %v3830_v31 = vpack.c.bf16 %v3226_v27, %v3226_v27  ;;  %v3832_v34 = vpack.c.bf16 %v3225_v28, %v3225_v28 }
 0xbe3   :  { %v1481_v29 = vpop.permute.xlu1 %1480 }
 0xbe4   :  { %v1486_v30 = vsel %vm164_vm2, %v1481_v29, 0  ;;  %1676 = vrot.lane.b32.xlu1 %v3822_v23, %s3401_s26  ;;  %1725 = vrot.lane.b32.xlu0 %v3820_v22, %s3401_s26 }
 0xbe5   :  { %3045 = vmatpush3.bf16.xpose.msra.mxu0 %v1486_v30 }
 0xbe6   :  { %3056 = vmatprep.subr.bf16.mxu0 %v3397_v0 }
 0xbe8   :  { %1774 = vrot.lane.b32.xlu1 %v3832_v34, %s3401_s26  ;;  %1823 = vrot.lane.b32.xlu0 %v3830_v31, %s3401_s26 }
 0xbe9   :  { %3053 = vmatmul.mubr.msk.bf16.vlgmr.msra.gmra.mrb[44].mxu1 %vm164_vm2, %v1472_v2 }
 0xbea   :  { %3064 = vmatprep.mubr.msk.bf16.mxu1 %vm3398_vm0, %v3397_v0 }
 0xbec   :  { %3047 = vmatmul.mubr.msk.bf16.vlgmr.msra.gmra.mrb[40].mxu0 %vm164_vm2, %v1471_v5  ;;  %2023 = vrot.lane.b32.xlu1 %v1472_v2, %s3403_s28 }
 0xbed   :  { %1975 = vrot.lane.b32.xlu0 %v1471_v5, %s3403_s28  ;;  %3058 = vmatprep.mubr.msk.bf16.mxu0 %vm3398_vm0, %v3397_v0 }
 0xc52   :  { %v1579_v35 = vpop.permute.xlu1 %1578  ;;  %v1628_v36 = vpop.permute.xlu0 %1627 }
 0xc53   :  { %v1584_v39 = vsel %vm164_vm2, %v1579_v35, 0  ;;  %v1633_v33 = vsel %vm164_vm2, %v1628_v36, 0 }
 0xc54   :  { %3057 = vmatpush3.bf16.xpose.msra.mxu0 %v1584_v39  ;;  %3063 = vmatpush3.bf16.xpose.msra.mxu1 %v1633_v33 }
 0xc55   :  { %3068 = vmatprep.subr.bf16.mxu0 %v3397_v0  ;;  %3074 = vmatprep.subr.bf16.mxu1 %v3397_v0 }
 0xc56   :  { %v1677_v26 = vpop.permute.xlu1 %1676  ;;  %v1726_v37 = vpop.permute.xlu0 %1725 }
 0xc57   :  { %v1682_v3 = vsel %vm164_vm2, %v1677_v26, 0  ;;  %v1731_v4 = vsel %vm164_vm2, %v1726_v37, 0 }
 0xc5a   :  { %v1775_v40 = vpop.permute.xlu1 %1774  ;;  %v1824_v42 = vpop.permute.xlu0 %1823 }
 0xc5b   :  { %3059 = vmatmul.mubr.msk.bf16.vlgmr.msra.gmra.mrb[44].mxu0 %vm164_vm2, %v3813_v18  ;;  %3065 = vmatmul.mubr.msk.bf16.vlgmr.msra.gmra.mrb[48].mxu1 %vm164_vm2, %v3811_v13  ;;  %v1780_v43 = vsel %vm164_vm2, %v1775_v40, 0  ;;  %v1829_v44 = vsel %vm164_vm2, %v1824_v42, 0 }
 0xc5c   :  { %3069 = vmatpush3.bf16.xpose.msra.mxu0 %v1682_v3  ;;  %3075 = vmatpush3.bf16.xpose.msra.mxu1 %v1731_v4 }
 0xc5d   :  { %3070 = vmatprep.mubr.msk.bf16.mxu0 %vm3398_vm0, %v3397_v0  ;;  %3076 = vmatprep.mubr.msk.bf16.mxu1 %vm3398_vm0, %v3397_v0 }
 0xc5e   :  { %3080 = vmatprep.subr.bf16.mxu0 %v3397_v0  ;;  %3086 = vmatprep.subr.bf16.mxu1 %v3397_v0  ;;  %v2024_v9 = vpop.permute.xlu1 %2023 }
 0xc5f   :  { %v1976_v45 = vpop.permute.xlu0 %1975  ;;  %v2029_v46 = vsel %vm663_vm3, %v2024_v9, 0 }
 0xc60   :  { %v1981_v48 = vsel %vm663_vm3, %v1976_v45, 0 }
 0xc63   :  { %3071 = vmatmul.mubr.msk.bf16.vlgmr.msra.gmra.mrb[48].mxu0 %vm164_vm2, %v3822_v23  ;;  %3077 = vmatmul.mubr.msk.bf16.vlgmr.msra.gmra.mrb[52].mxu1 %vm164_vm2, %v3820_v22 }
 0xc64   :  { %3081 = vmatpush3.bf16.xpose.msra.mxu0 %v1780_v43  ;;  %3087 = vmatpush3.bf16.xpose.msra.mxu1 %v1829_v44 }
 0xc65   :  { %3082 = vmatprep.mubr.msk.bf16.mxu0 %vm3398_vm0, %v3397_v0  ;;  %3088 = vmatprep.mubr.msk.bf16.mxu1 %vm3398_vm0, %v3397_v0 }
 0xc66   :  { %3092 = vmatprep.subr.bf16.mxu0 %v3397_v0  ;;  %3098 = vmatprep.subr.bf16.mxu1 %v3397_v0 }
 0xc6b   :  { %3083 = vmatmul.mubr.msk.bf16.vlgmr.msra.gmra.mrb[52].mxu0 %vm164_vm2, %v3832_v34  ;;  %3089 = vmatmul.mubr.msk.bf16.vlgmr.msra.gmra.mrb[56].mxu1 %vm164_vm2, %v3830_v31 }
 0xc6c   :  { %3093 = vmatpush3.bf16.msra.mxu0 %v1981_v48  ;;  %3099 = vmatpush3.bf16.msra.mxu1 %v2029_v46 }
 0xc6d   :  { %3094 = vmatprep.mubr.msk.bf16.mxu0 %vm3398_vm0, %v3397_v0  ;;  %3100 = vmatprep.mubr.msk.bf16.mxu1 %vm3398_vm0, %v3397_v0 }
 0xc6e   :  { %3104 = vmatprep.subr.bf16.mxu0 %v3397_v0  ;;  %3110 = vmatprep.subr.bf16.mxu1 %v3397_v0 }
 0xcbc   :  { %v1571_v10 = vpop.f32.mrb[44].mxu1 }
 0xcbd   :  { %v1872_v50 = vmul.f32 0.35355338, %v1571_v10  ;;  %v3054_v51 = vpop.f32.mrb[45].mxu1 }
 0xcbe   :  { %v1574_v53 = vpop.f32.mrb[46].mxu1 }
 0xcbf   :  { %v3055_v54 = vpop.f32.mrb[47].mxu1  ;;  %v1522_v55 = vpop.f32.mrb[40].mxu0  ;;  %v1882_v57 = vsel %vm164_vm2, %v1872_v50, -inf }
 0xcc0   :  { %v1871_v60 = vmul.f32 0.35355338, %v1522_v55  ;;  %1883 = vmax.xlane.f32.xlu0 %v1882_v57  ;;  %v3048_v61 = vpop.f32.mrb[41].mxu0 }
 0xcc1   :  { %v1525_v63 = vpop.f32.mrb[42].mxu0 }
 0xcc2   :  { %v3049_v24 = vpop.f32.mrb[43].mxu0  ;;  %v1879_v25 = vsel %vm164_vm2, %v1871_v60, -inf }
 0xcc3   :  { %1880 = vmax.xlane.f32.xlu1 %v1879_v25 }
 0xd2e   :  { %v1620_v1 = vpop.f32.mrb[44].mxu0  ;;  %v1669_v56 = vpop.f32.mrb[48].mxu1 }
 0xd2f   :  { %v1873_v62 = vmul.f32 0.35355338, %v1620_v1  ;;  %v1874_v2 = vmul.f32 0.35355338, %v1669_v56  ;;  %v3060_v5 = vpop.f32.mrb[45].mxu0  ;;  %v3066_v6 = vpop.f32.mrb[49].mxu1 }
 0xd30   :  { %v1623_v11 = vpop.f32.mrb[46].mxu0  ;;  %v1672_v14 = vpop.f32.mrb[50].mxu1 }
 0xd31   :  { %v3061_v15 = vpop.f32.mrb[47].mxu0  ;;  %v3067_v16 = vpop.f32.mrb[51].mxu1  ;;  %v1885_v12 = vsel %vm164_vm2, %v1873_v62, -inf  ;;  %v1888_v19 = vsel %vm164_vm2, %v1874_v2, -inf }
 0xd32   :  { %1886 = vmax.xlane.f32.xlu0 %v1885_v12  ;;  %1889 = vmax.xlane.f32.xlu1 %v1888_v19 }
 0xd36   :  { %v1718_v20 = vpop.f32.mrb[48].mxu0  ;;  %v1767_v21 = vpop.f32.mrb[52].mxu1 }
 0xd37   :  { %v3891_v27 = vmul.f32 0.35355338, %v1718_v20  ;;  %v1876_v28 = vmul.f32 0.35355338, %v1767_v21  ;;  %v3072_v29 = vpop.f32.mrb[49].mxu0  ;;  %v3078_v30 = vpop.f32.mrb[53].mxu1 }
 0xd38   :  { %v1721_v35 = vpop.f32.mrb[50].mxu0  ;;  %v1770_v36 = vpop.f32.mrb[54].mxu1 }
 0xd39   :  { %v3073_v39 = vpop.f32.mrb[51].mxu0  ;;  %v3079_v33 = vpop.f32.mrb[55].mxu1  ;;  %v1891_v26 = vsel %vm164_vm2, %v3891_v27, -inf  ;;  %v1894_v37 = vsel %vm164_vm2, %v1876_v28, -inf }
 0xd3a   :  { %1892 = vmax.xlane.f32.xlu0 %v1891_v26  ;;  %1895 = vmax.xlane.f32.xlu1 %v1894_v37 }
 0xd3e   :  { %v1816_v3 = vpop.f32.mrb[52].mxu0  ;;  %v1865_v4 = vpop.f32.mrb[56].mxu1 }
 0xd3f   :  { %v3896_v40 = vmul.f32 0.35355338, %v1816_v3  ;;  %v1878_v42 = vmul.f32 0.35355338, %v1865_v4  ;;  %v3084_v43 = vpop.f32.mrb[53].mxu0  ;;  %v3090_v44 = vpop.f32.mrb[57].mxu1 }
 0xd40   :  { %v1819_v9 = vpop.f32.mrb[54].mxu0  ;;  %v1868_v45 = vpop.f32.mrb[58].mxu1 }
 0xd41   :  { %v3085_v46 = vpop.f32.mrb[55].mxu0  ;;  %v3091_v48 = vpop.f32.mrb[59].mxu1  ;;  %v1897_v10 = vsel %vm164_vm2, %v3896_v40, -inf  ;;  %v1900_v51 = vsel %vm164_vm2, %v1878_v42, -inf }
 0xd42   :  { %1898 = vmax.xlane.f32.xlu0 %v1897_v10  ;;  %1901 = vmax.xlane.f32.xlu1 %v1900_v51 }
 0xd4d   :  { %v1884_v53 = vpop.xlane.xlu0 %1883 }
 0xd4e   :  { %v1904_v55 = vsub.f32 %v1872_v50, %v1884_v53 }
 0xd50   :  { %v1881_v54 = vpop.xlane.xlu1 %1880  ;;  %v1913_v61 = vmul.f32 1.442695, %v1904_v55 }
 0xd51   :  { %v1903_v57 = vsub.f32 %v1871_v60, %v1881_v54 }
 0xd52   :  { %3302 = vpow2.f32 %v1913_v61 }
 0xd53   :  { %2071 = vrot.lane.b32.xlu1 %v3813_v18, %s3403_s28  ;;  %v1911_v63 = vmul.f32 1.442695, %v1903_v57 }
 0xd55   :  { %3304 = vpow2.f32 %v1911_v63 }
 0xd58   :  { %2119 = vrot.lane.b32.xlu0 %v3811_v13, %s3403_s28 }
 0xd5c   :  { %v3303_v24 = vpop.eup %3302 }
 0xd5d   :  { %v1930_v56 = vsel %vm164_vm2, %v3303_v24, 0.0 }
 0xd5f   :  { %v3305_v25 = vpop.eup %3304 }
 0xd60   :  { %v1927_v1 = vsel %vm164_vm2, %v3305_v25, 0.0 }
 0xd77   :  { %1928 = vadd.xlane.f32.xlu0 %v1927_v1  ;;  %1931 = vadd.xlane.f32.xlu1 %v1930_v56 }
 0xd88   :  { %2167 = vrot.lane.b32.xlu1 %v3822_v23, %s3403_s28 }
 0xdbf   :  { %v1887_v13 = vpop.xlane.xlu0 %1886  ;;  %v1890_v18 = vpop.xlane.xlu1 %1889 }
 0xdc0   :  { %v1905_v5 = vsub.f32 %v1873_v62, %v1887_v13  ;;  %v1906_v50 = vsub.f32 %v1874_v2, %v1890_v18 }
 0xdc2   :  { %v1915_v60 = vmul.f32 1.442695, %v1905_v5  ;;  %v1917_v6 = vmul.f32 1.442695, %v1906_v50 }
 0xdc4   :  { %3306 = vpow2.f32 %v1915_v60 }
 0xdc5   :  { %3308 = vpow2.f32 %v1917_v6 }
 0xdc7   :  { %v1896_v11 = vpop.xlane.xlu1 %1895  ;;  %v1893_v35 = vpop.xlane.xlu0 %1892 }
 0xdc8   :  { %v1908_v14 = vsub.f32 %v1876_v28, %v1896_v11  ;;  %v1907_v36 = vsub.f32 %v3891_v27, %v1893_v35 }
 0xdca   :  { %v1921_v15 = vmul.f32 1.442695, %v1908_v14  ;;  %v1919_v33 = vmul.f32 1.442695, %v1907_v36 }
 0xdcc   :  { %3310 = vpow2.f32 %v1921_v15 }
 0xdce   :  { %v3909_v16 = vpop.eup %3306 }
 0xdcf   :  { %v3911_v12 = vpop.eup %3308  ;;  %v1902_v19 = vpop.xlane.xlu1 %1901  ;;  %v1933_v23 = vsel %vm164_vm2, %v3909_v16, 0.0 }
 0xdd0   :  { %v1910_v20 = vsub.f32 %v1878_v42, %v1902_v19  ;;  %1934 = vadd.xlane.f32.xlu0 %v1933_v23  ;;  %v1936_v62 = vsel %vm164_vm2, %v3911_v12, 0.0  ;;  %v1899_v39 = vpop.xlane.xlu0 %1898 }
 0xdd1   :  { %1937 = vadd.xlane.f32.xlu1 %v1936_v62  ;;  %v1909_v26 = vsub.f32 %v3896_v40, %v1899_v39 }
 0xdd2   :  { %v1925_v2 = vmul.f32 1.442695, %v1910_v20 }
 0xdd3   :  { %v1923_v37 = vmul.f32 1.442695, %v1909_v26  ;;  %v2072_v4 = vpop.permute.xlu1 %2071 }
 0xdd4   :  { %3312 = vpow2.f32 %v1925_v2  ;;  %v2120_v3 = vpop.permute.xlu0 %2119  ;;  %v2077_v51 = vsel %vm663_vm3, %v2072_v4, 0 }
 0xdd5   :  { %3314 = vpow2.f32 %v1919_v33  ;;  %v2125_v53 = vsel %vm663_vm3, %v2120_v3, 0 }
 0xdd6   :  { %v3917_v21 = vpop.eup %3310  ;;  %3316 = vpow2.f32 %v1923_v37 }
 0xdd7   :  { %v1942_v28 = vsel %vm164_vm2, %v3917_v21, 0.0 }
 0xdd8   :  { %1943 = vadd.xlane.f32.xlu1 %v1942_v28 }
 0xdde   :  { %v3921_v29 = vpop.eup %3312 }
 0xddf   :  { %v1948_v30 = vsel %vm164_vm2, %v3921_v29, 0.0  ;;  %v3931_v42 = vpop.eup %3314 }
 0xde0   :  { %1949 = vadd.xlane.f32.xlu1 %v1948_v30  ;;  %v3935_v27 = vpop.eup %3316 }
 0xde6   :  { %2215 = vrot.lane.b32.xlu0 %v3820_v22, %s3403_s28  ;;  %v1939_v22 = vsel %vm164_vm2, %v3931_v42, 0.0 }
 0xdf1   :  { %2263 = vrot.lane.b32.xlu1 %v3832_v34, %s3403_s28  ;;  %v1945_v34 = vsel %vm164_vm2, %v3935_v27, 0.0 }
 0xe04   :  { %v1929_v43 = vpop.xlane.xlu0 %1928  ;;  %v1932_v44 = vpop.xlane.xlu1 %1931 }
 0xe05   :  { %3318 = vrcp.f32 %v1929_v43  ;;  %1940 = vadd.xlane.f32.xlu0 %v1939_v22 }
 0xe06   :  { %3320 = vrcp.f32 %v1932_v44 }
 0xe08   :  { %v2168_v54 = vpop.permute.xlu1 %2167 }
 0xe09   :  { %1946 = vadd.xlane.f32.xlu0 %v1945_v34  ;;  %v2173_v5 = vsel %vm663_vm3, %v2168_v54, 0 }
 0xe0f   :  { %v3319_v40 = vpop.eup %3318 }
 0xe10   :  { %v3321_v9 = vpop.eup %3320  ;;  %v1952_v45 = vmul.f32 %v3319_v40, %v3305_v25 }
 0xe11   :  { %v1954_v46 = vmul.f32 %v3321_v9, %v3303_v24 }
 0xe12   :  { %v1967_v48 = vpack.c.bf16 %v1952_v45, %v1952_v45 }
 0xe13   :  { %v1968_v10 = vpack.c.bf16 %v1954_v46, %v1954_v46 }
 0xe14   :  { %3095 = vmatmul.mubr.msk.bf16.vlgmr.msra.gmra.mrb[56].mxu0 %vm164_vm2, %v1967_v48 }
 0xe15   :  { %3101 = vmatmul.mubr.msk.bf16.vlgmr.msra.gmra.mrb[60].mxu1 %vm164_vm2, %v1968_v10  ;;  %3105 = vmatpush3.bf16.msra.mxu0 %v2077_v51 }
 0xe16   :  { %3111 = vmatpush3.bf16.msra.mxu1 %v2125_v53  ;;  %3106 = vmatprep.mubr.msk.bf16.mxu0 %vm3398_vm0, %v3397_v0 }
 0xe17   :  { %3112 = vmatprep.mubr.msk.bf16.mxu1 %vm3398_vm0, %v3397_v0  ;;  %3116 = vmatprep.subr.bf16.mxu0 %v3397_v0 }
 0xe18   :  { %3122 = vmatprep.subr.bf16.mxu1 %v3397_v0 }
 0xe1f   :  { %2311 = vrot.lane.b32.xlu0 %v3830_v31, %s3403_s28 }
 0xe5d   :  { %v1935_v55 = vpop.xlane.xlu0 %1934 }
 0xe5e   :  { %3322 = vrcp.f32 %v1935_v55  ;;  %v1938_v57 = vpop.xlane.xlu1 %1937  ;;  %v3254_v55 = vld [vmem:[%s4092_s2 + $0x10] sm:$0xff]  }
 0xe5f   :  { %3324 = vrcp.f32 %v1938_v57 }
 0xe61   :  { %v2216_v56 = vpop.permute.xlu0 %2215 }
 0xe62   :  { %v2221_v31 = vsel %vm663_vm3, %v2216_v56, 0 }
 0xe65   :  { %v1944_v61 = vpop.xlane.xlu1 %1943 }
 0xe66   :  { %3326 = vrcp.f32 %v1944_v61 }
 0xe68   :  { %v3323_v63 = vpop.eup %3322 }
 0xe69   :  { %v3325_v24 = vpop.eup %3324  ;;  %v1956_v25 = vmul.f32 %v3323_v63, %v3909_v16 }
 0xe6a   :  { %v1958_v1 = vmul.f32 %v3325_v24, %v3911_v12 }
 0xe6b   :  { %v1969_v13 = vpack.c.bf16 %v1956_v25, %v1956_v25 }
 0xe6c   :  { %v1970_v18 = vpack.c.bf16 %v1958_v1, %v1958_v1  ;;  %v3255_v1 = vld [vmem:[%s4092_s2 + $0x18] sm:$0xff]  }
 0xe6d   :  { %3107 = vmatmul.mubr.msk.bf16.vlgmr.msra.gmra.mrb[60].mxu0 %vm164_vm2, %v1969_v13  ;;  %v1950_v11 = vpop.xlane.xlu1 %1949 }
 0xe6e   :  { %3113 = vmatmul.mubr.msk.bf16.vlgmr.msra.gmra.mrb[64].mxu1 %vm164_vm2, %v1970_v18  ;;  %3117 = vmatpush3.bf16.msra.mxu0 %v2173_v5  ;;  %3328 = vrcp.f32 %v1950_v11 }
 0xe6f   :  { %3123 = vmatpush3.bf16.msra.mxu1 %v2221_v31  ;;  %3124 = vmatprep.mubr.msk.bf16.mxu1 %vm3398_vm0, %v3397_v0 }
 0xe70   :  { %3134 = vmatprep.subr.bf16.mxu1 %v3397_v0  ;;  %3118 = vmatprep.mubr.msk.bf16.mxu0 %vm3398_vm0, %v3397_v0  ;;  %v3327_v50 = vpop.eup %3326 }
 0xe71   :  { %3128 = vmatprep.subr.bf16.mxu0 %v3397_v0  ;;  %v1962_v60 = vmul.f32 %v3327_v50, %v3917_v21  ;;  %v2264_v21 = vpop.permute.xlu1 %2263 }
 0xe73   :  { %v1972_v6 = vpack.c.bf16 %v1962_v60, %v1962_v60 }
 0xe76   :  { %3125 = vmatmul.mubr.msk.bf16.vlgmr.msra.gmra.mrb[68].mxu1 %vm164_vm2, %v1972_v6 }
 0xe77   :  { %3136 = vmatprep.mubr.msk.bf16.mxu1 %vm3398_vm0, %v3397_v0 }
 0xe78   :  { %v3329_v15 = vpop.eup %3328 }
 0xe79   :  { %v1966_v12 = vmul.f32 %v3329_v15, %v3921_v29  ;;  %v2269_v29 = vsel %vm663_vm3, %v2264_v21, 0 }
 0xe7b   :  { %v1974_v62 = vpack.c.bf16 %v1966_v12, %v1966_v12 }
 0xe92   :  { %v1941_v14 = vpop.xlane.xlu0 %1940 }
 0xe93   :  { %3330 = vrcp.f32 %v1941_v14 }
 0xe96   :  { %v1947_v16 = vpop.xlane.xlu0 %1946 }
 0xe97   :  { %3332 = vrcp.f32 %v1947_v16 }
 0xe9a   :  { %v2312_v19 = vpop.permute.xlu0 %2311 }
 0xe9b   :  { %v2317_v23 = vsel %vm663_vm3, %v2312_v19, 0 }
 0xe9c   :  { %3135 = vmatpush3.bf16.msra.mxu1 %v2317_v23 }
 0xe9d   :  { %v3331_v20 = vpop.eup %3330  ;;  %3148 = vmatprep.subr.bf16.mxu1 %v3397_v0 }
 0xe9e   :  { %v1960_v2 = vmul.f32 %v3331_v20, %v3931_v42 }
 0xe9f   :  { %3137 = vmatmul.mubr.msk.bf16.vlgmr.msra.gmra.mrb[72].mxu1 %vm164_vm2, %v1974_v62 }
 0xea0   :  { %v1971_v28 = vpack.c.bf16 %v1960_v2, %v1960_v2  ;;  %3152 = vmatprep.mubr.msk.bf16.mxu1 %vm3398_vm0, %v3397_v0 }
 0xea1   :  { %v3333_v30 = vpop.eup %3332 }
 0xea2   :  { %3119 = vmatmul.mubr.msk.bf16.vlgmr.msra.gmra.mrb[64].mxu0 %vm164_vm2, %v1971_v28  ;;  %v1964_v35 = vmul.f32 %v3333_v30, %v3935_v27 }
 0xea3   :  { %3129 = vmatpush3.bf16.msra.mxu0 %v2269_v29  ;;  %3130 = vmatprep.mubr.msk.bf16.mxu0 %vm3398_vm0, %v3397_v0 }
 0xea4   :  { %3140 = vmatprep.subr.bf16.mxu0 %v3397_v0  ;;  %v1973_v36 = vpack.c.bf16 %v1964_v35, %v1964_v35 }
 0xeaa   :  { %3131 = vmatmul.mubr.msk.bf16.vlgmr.msra.gmra.mrb[68].mxu0 %vm164_vm2, %v1973_v36 }
 0xeab   :  { %3144 = vmatprep.mubr.msk.bf16.mxu0 %vm3398_vm0, %v3397_v0  ;;  %3141 = vmatpush3.bf16.msra.mxu0 %v3254_v55  ;;  %v3256_v55 = vld [vmem:[%s4093_s3 + $0x10] sm:$0xff]  }
 0xeac   :  { %3142 = vmatprep.subr.bf16.mxu0 %v3397_v0  ;;  %3149 = vmatpush3.bf16.msra.mxu1 %v3256_v55 }
 0xead   :  { %3150 = vmatprep.subr.bf16.mxu1 %v3397_v0 }
 0xeaf   :  { %3143 = vmatpush3.bf16.msra.mxu0 %v3255_v1 }
 0xeb0   :  { %3156 = vmatprep.subr.bf16.mxu0 %v3397_v0 }
 0xee7   :  { %v2017_v39 = vpop.f32.mrb[56].mxu0 }
 0xee8   :  { %v2065_v33 = vpop.f32.mrb[60].mxu1  ;;  %v3096_v26 = vpop.f32.mrb[57].mxu0 }
 0xee9   :  { %v3102_v37 = vpop.f32.mrb[61].mxu1  ;;  %v2020_v3 = vpop.f32.mrb[58].mxu0 }
 0xeea   :  { %v2068_v4 = vpop.f32.mrb[62].mxu1  ;;  %v3097_v42 = vpop.f32.mrb[59].mxu0 }
 0xeeb   :  { %v3103_v43 = vpop.f32.mrb[63].mxu1 }
 0xf40   :  { %v2113_v44 = vpop.f32.mrb[60].mxu0 }
 0xf41   :  { %v2161_v22 = vpop.f32.mrb[64].mxu1  ;;  %v3108_v34 = vpop.f32.mrb[61].mxu0 }
 0xf42   :  { %v3227_v27 = vpack.i.bf16 %v2161_v22, %v2113_v44  ;;  %v3114_v40 = vpop.f32.mrb[65].mxu1  ;;  %v2116_v9 = vpop.f32.mrb[62].mxu0 }
 0xf43   :  { %v2164_v45 = vpop.f32.mrb[66].mxu1  ;;  %v3109_v46 = vpop.f32.mrb[63].mxu0 }
 0xf44   :  { %3228 = vrot.lane.b32.xlu1 %v3227_v27, %s3396_s16  ;;  %v3115_v48 = vpop.f32.mrb[67].mxu1 }
 0xf49   :  { %v2257_v10 = vpop.f32.mrb[68].mxu1 }
 0xf4a   :  { %v3126_v51 = vpop.f32.mrb[69].mxu1 }
 0xf4b   :  { %v2260_v53 = vpop.f32.mrb[70].mxu1 }
 0xf4c   :  { %v3127_v54 = vpop.f32.mrb[71].mxu1 }
 0xf72   :  { %v2353_v57 = vpop.f32.mrb[72].mxu1 }
 0xf73   :  { %v3138_v61 = vpop.f32.mrb[73].mxu1 }
 0xf74   :  { %v2356_v63 = vpop.f32.mrb[74].mxu1  ;;  %v3258_v61 = vld [vmem:[%s4094_s4 + $0x20] sm:$0xff]  }
 0xf75   :  { %v2209_v24 = vpop.f32.mrb[64].mxu0  ;;  %v3139_v25 = vpop.f32.mrb[75].mxu1  ;;  %v3259_v63 = vld [vmem:[%s4094_s4 + $0x28] sm:$0xff]  }
 0xf76   :  { %v3232_v56 = vpack.i.bf16 %v2257_v10, %v2209_v24  ;;  %v3120_v13 = vpop.f32.mrb[65].mxu0 }
 0xf77   :  { %v2212_v18 = vpop.f32.mrb[66].mxu0 }
 0xf78   :  { %v3121_v5 = vpop.f32.mrb[67].mxu0  ;;  %3233 = vrot.lane.b32.xlu0 %v3232_v56, %s3404_s11 }
 0xf7d   :  { %v2305_v31 = vpop.f32.mrb[68].mxu0 }
 0xf7e   :  { %v3237_v50 = vpack.i.bf16 %v2353_v57, %v2305_v31  ;;  %v3132_v60 = vpop.f32.mrb[69].mxu0  ;;  %v2494_v57 = vrot.slane %v3798_v38, %v3725_v41 }
 0xf7f   :  { %v2308_v6 = vpop.f32.mrb[70].mxu0 }
 0xf80   :  { %v3133_v11 = vpop.f32.mrb[71].mxu0  ;;  %3238 = vrot.lane.b32.xlu1 %v3237_v50, %s3405_s12 }
 0xfb6   :  { %v3229_v14 = vpop.permute.xlu1 %3228 }
 0xfb7   :  { %v3231_v16 = vunpack.i.h.bf16 %v3229_v14  ;;  %v3230_v12 = vunpack.i.l.bf16 %v3229_v14 }
 0xfb9   :  { %v2384_v62 = vsel %vm164_vm2, %v2065_v33, %v3231_v16  ;;  %v2383_v2 = vsel %vm164_vm2, %v2017_v39, %v3230_v12  ;;  %v4006_v39 = vld [vmem:[%s4096_s6 + $0x8] sm:$0x3f] }
 0xfba   :  { %v2393_v33 = vrot.slane %v4006_v39, %v3494_v8  ;;  %v2481_v5 = vrot.slane %v4006_v39, %v3725_v41  ;;  %v2487_v11 = vrot.slane %v4006_v39, %v1173_v52 }
 0xfea   :  { %v3234_v15 = vpop.permute.xlu0 %3233 }
 0xfeb   :  { %v3236_v19 = vunpack.i.h.bf16 %v3234_v15  ;;  %v3235_v23 = vunpack.i.l.bf16 %v3234_v15 }
 0xfed   :  { %v2386_v30 = vsel %vm1069_vm4, %v2384_v62, %v3236_v19  ;;  %v2385_v29 = vsel %vm1069_vm4, %v2383_v2, %v3235_v23  ;;  %v3260_v19 = vld [vmem:[%s4094_s4 + $0x30] sm:$0xff]   ;;  %v3261_v23 = vld [vmem:[%s4094_s4 + $0x38] sm:$0xff]  }
 0xff2   :  { %v3239_v20 = vpop.permute.xlu1 %3238 }
 0xff3   :  { %v3241_v21 = vunpack.i.h.bf16 %v3239_v20  ;;  %v3240_v28 = vunpack.i.l.bf16 %v3239_v20 }
 0xff5   :  { %v2388_v35 = vsel %vm1072_vm5, %v2386_v30, %v3241_v21  ;;  %v2387_v36 = vsel %vm1072_vm5, %v2385_v29, %v3240_v28 }
 0xff6   :  { %v2389_v26 = vpack.c.bf16 %v2388_v35, %v2387_v36 }
 0xff8   :  { %3145 = vmatmul.mubr.msk.bf16.vlgmr.msra.gmra.mrb[72].mxu0 %vm88_vm1, %v2389_v26 }
 0xff9   :  { %3164 = vmatprep.mubr.msk.bf16.mxu0 %vm3398_vm0, %v3397_v0  ;;  %3157 = vmatpush3.bf16.msra.mxu0 %v3258_v61 }
 0xffa   :  { %3158 = vmatprep.subr.bf16.mxu0 %v3397_v0 }
 0xffd   :  { %3159 = vmatpush3.bf16.msra.mxu0 %v3259_v63 }
 0xffe   :  { %3160 = vmatprep.subr.bf16.mxu0 %v3397_v0 }
0x1001   :  { %3161 = vmatpush3.bf16.msra.mxu0 %v3260_v19 }
0x1002   :  { %3162 = vmatprep.subr.bf16.mxu0 %v3397_v0  ;;  %v2563_v0 = vrot.slane %v4006_v39, %v1249_v32 }
0x1005   :  { %3163 = vmatpush3.bf16.msra.mxu0 %v3261_v23 }
0x10cb   :  { %v2443_v37 = vpop.f32.mrb[72].mxu0 }
0x10cc   :  { %v2444_v3 = vadd.f32 %v2443_v37, %v2393_v33  ;;  %v3146_v4 = vpop.f32.mrb[73].mxu0 }
0x10cd   :  { %v2446_v42 = vpop.f32.mrb[74].mxu0 }
0x10ce   :  { %v2447_v43 = vadd.f32 %v2446_v42, %v2393_v33  ;;  %v3147_v44 = vpop.f32.mrb[75].mxu0  ;;  %v2450_v22 = vadd.f32 %v2444_v3, %v3786_v58 }
0x10d0   :  { %v2452_v34 = vsel %vm88_vm1, %v2450_v22, 0.0  ;;  %v2451_v27 = vadd.f32 %v2447_v43, %v3788_v59 }
0x10d1   :  { %2453 = vadd.xlane.f32.xlu0 %v2452_v34 }
0x10d2   :  { %v2455_v40 = vsel %vm88_vm1, %v2451_v27, 0.0 }
0x10d3   :  { %2456 = vadd.xlane.f32.xlu1 %v2455_v40 }
0x10e4   :  { %2507 = vrot.lane.b32.xlu1 %v3802_v17, %s3406_s22  ;;  %v3257_v17 = vld [vmem:[%s4093_s3 + $0x18] sm:$0xff]  }
0x10e5   :  { %3151 = vmatpush3.bf16.msra.mxu1 %v3257_v17 }
0x115e   :  { %v2454_v9 = vpop.xlane.xlu0 %2453 }
0x115f   :  { %v2458_v45 = vmul.f32 0.03125, %v2454_v9 }
0x1160   :  { %v2457_v46 = vpop.xlane.xlu1 %2456 }
0x1161   :  { %v2460_v48 = vsub.f32 %v2450_v22, %v2458_v45  ;;  %v2459_v10 = vmul.f32 0.03125, %v2457_v46 }
0x1163   :  { %v2461_v51 = vsub.f32 %v2451_v27, %v2459_v10  ;;  %v2462_v53 = vmul.f32 %v2460_v48, %v2460_v48 }
0x1164   :  { %v2508_v52 = vpop.permute.xlu1 %2507 }
0x1165   :  { %v2464_v58 = vsel %vm88_vm1, %v2462_v53, 0.0  ;;  %v2463_v54 = vmul.f32 %v2461_v51, %v2461_v51 }
0x1166   :  { %2465 = vadd.xlane.f32.xlu0 %v2464_v58 }
0x1167   :  { %v2467_v59 = vsel %vm88_vm1, %v2463_v54, 0.0 }
0x116a   :  { %2468 = vadd.xlane.f32.xlu0 %v2467_v59 }
0x1180   :  { %2509 = vrot.lane.b32.xlu0 %v2494_v57, %s3406_s22 }
0x11f3   :  { %v2466_v24 = vpop.xlane.xlu0 %2465 }
0x11f4   :  { %v2470_v25 = vmul.f32 0.03125, %v2466_v24  ;;  %v2663_v24 = vrot.slane %v4006_v39, %v1350_v47 }
0x11f6   :  { %v2472_v1 = vadd.f32 1e-05, %v2470_v25 }
0x11f7   :  { %v2469_v38 = vpop.xlane.xlu0 %2468 }
0x11f8   :  { %3334 = vrsqrt.f32 %v2472_v1  ;;  %v2471_v56 = vmul.f32 0.03125, %v2469_v38  ;;  %v2669_v38 = vrot.slane %v4006_v39, %v1356_v49 }
0x11fa   :  { %v2473_v13 = vadd.f32 1e-05, %v2471_v56 }
0x11fb   :  { %v2510_v20 = vpop.permute.xlu0 %2509 }
0x11fc   :  { %3336 = vrsqrt.f32 %v2473_v13  ;;  %v2511_v62 = vsel %vm88_vm1, %v2508_v52, %v2510_v20 }
0x1202   :  { %v3335_v18 = vpop.eup %3334 }
0x1203   :  { %v2476_v31 = vmul.f32 %v3335_v18, %v2460_v48 }
0x1205   :  { %v2482_v60 = vmul.f32 %v2481_v5, %v2476_v31 }
0x1206   :  { %v3337_v50 = vpop.eup %3336 }
0x1207   :  { %v2477_v6 = vmul.f32 %v3337_v50, %v2461_v51  ;;  %v2488_v15 = vadd.f32 %v2487_v11, %v2482_v60 }
0x1209   :  { %v2483_v14 = vmul.f32 %v2481_v5, %v2477_v6 }
0x120b   :  { %v2489_v16 = vadd.f32 %v2487_v11, %v2483_v14 }
0x120d   :  { %v2490_v12 = vpack.c.bf16 %v2489_v16, %v2488_v15 }
0x120f   :  { %3153 = vmatmul.mubr.msk.bf16.vlgmr.msra.gmra.mrb[76].mxu1 %vm88_vm1, %v2490_v12 }
0x12e2   :  { %v2550_v2 = vpop.f32.mrb[76].mxu1 }
0x12e3   :  { %v2551_v21 = vadd.f32 %v2550_v2, %v2511_v62  ;;  %v3154_v28 = vpop.f32.mrb[77].mxu1 }
0x12e4   :  { %v2553_v30 = vpop.f32.mrb[78].mxu1  ;;  %v2672_v28 = vld [vmem:[%s4097_s7] sm:$0x3]  ;;  %s3368_s7 = scalar_lea.vmem %s2719_s14, 256 }
0x12e5   :  { %v2554_v29 = vadd.f32 %v2553_v30, %v2511_v62  ;;  %v3155_v35 = vpop.f32.mrb[79].mxu1  ;;  %v2557_v36 = vmax.f32 %v2551_v21, 0.0  ;;  %v2702_v30 = vrot.slane %v2672_v28, %v3494_v8  ;;  %p3369_p8 = scmp.ne.s32.totalorder %s2719_s14, %s3368_s7  ;;  %p3374_p10 = scmp.lt.s32.totalorder %s3368_s7, %s3368_s7 }
0x12e7   :  { %v2558_v26 = vmax.f32 %v2554_v29, 0.0  ;;  %p3375_p11 = por %p3374_p10, %p3373_p9 }
0x12e9   :  { %v2559_v33 = vpack.c.bf16 %v2558_v26, %v2557_v36  ;;  %v2708_v36 = vrot.slane %v2672_v28, %v3725_v41  ;;  %p3376_p12 = pnand %p3375_p11, %p3369_p8 }
0x12eb   :  { %3165 = vmatmul.mubr.msk.bf16.vlgmr.msra.gmra.mrb[76].mxu0 %vm1275_vm6, %v2559_v33 }
0x13be   :  { %v2625_v37 = vpop.f32.mrb[76].mxu0 }
0x13bf   :  { %v2626_v3 = vadd.f32 %v2625_v37, %v2563_v0  ;;  %v3166_v4 = vpop.f32.mrb[77].mxu0 }
0x13c0   :  { %v2628_v42 = vpop.f32.mrb[78].mxu0 }
0x13c1   :  { %v2629_v43 = vadd.f32 %v2628_v42, %v2563_v0  ;;  %v3167_v44 = vpop.f32.mrb[79].mxu0  ;;  %v2632_v22 = vadd.f32 %v2626_v3, %v2488_v15 }
0x13c3   :  { %v2634_v34 = vsel %vm88_vm1, %v2632_v22, 0.0  ;;  %v2633_v27 = vadd.f32 %v2629_v43, %v2489_v16 }
0x13c4   :  { %2635 = vadd.xlane.f32.xlu1 %v2634_v34 }
0x13c5   :  { %v2637_v40 = vsel %vm88_vm1, %v2633_v27, 0.0 }
0x13c6   :  { %2638 = vadd.xlane.f32.xlu0 %v2637_v40 }
0x1451   :  { %v2636_v9 = vpop.xlane.xlu1 %2635 }
0x1452   :  { %v2640_v45 = vmul.f32 0.03125, %v2636_v9 }
0x1453   :  { %v2639_v46 = vpop.xlane.xlu0 %2638 }
0x1454   :  { %v2642_v48 = vsub.f32 %v2632_v22, %v2640_v45  ;;  %v2641_v10 = vmul.f32 0.03125, %v2639_v46 }
0x1456   :  { %v2643_v32 = vsub.f32 %v2633_v27, %v2641_v10  ;;  %v2644_v51 = vmul.f32 %v2642_v48, %v2642_v48 }
0x1458   :  { %v2646_v53 = vsel %vm88_vm1, %v2644_v51, 0.0  ;;  %v2645_v58 = vmul.f32 %v2643_v32, %v2643_v32 }
0x1459   :  { %2647 = vadd.xlane.f32.xlu1 %v2646_v53 }
0x145a   :  { %v2649_v54 = vsel %vm88_vm1, %v2645_v58, 0.0 }
0x145b   :  { %2650 = vadd.xlane.f32.xlu0 %v2649_v54 }
0x14e6   :  { %v2648_v59 = vpop.xlane.xlu1 %2647 }
0x14e7   :  { %v2652_v55 = vmul.f32 0.03125, %v2648_v59 }
0x14e8   :  { %v2651_v17 = vpop.xlane.xlu0 %2650 }
0x14e9   :  { %v2654_v57 = vadd.f32 1e-05, %v2652_v55  ;;  %v2653_v61 = vmul.f32 0.03125, %v2651_v17 }
0x14eb   :  { %3338 = vrsqrt.f32 %v2654_v57  ;;  %v2655_v63 = vadd.f32 1e-05, %v2653_v61 }
0x14ed   :  { %3340 = vrsqrt.f32 %v2655_v63 }
0x14f5   :  { %v3339_v25 = vpop.eup %3338 }
0x14f6   :  { %v2658_v1 = vmul.f32 %v3339_v25, %v2642_v48 }
0x14f7   :  { %v3341_v56 = vpop.eup %3340 }
0x14f8   :  { %v2664_v13 = vmul.f32 %v2663_v24, %v2658_v1  ;;  %v2659_v18 = vmul.f32 %v3341_v56, %v2643_v32 }
0x14fa   :  { %v2670_v5 = vadd.f32 %v2669_v38, %v2664_v13  ;;  %v2665_v31 = vmul.f32 %v2663_v24, %v2659_v18 }
0x14fc   :  { %v2673_v50 = vsel %vm88_vm1, %v2670_v5, 0.0  ;;  %v2671_v60 = vadd.f32 %v2669_v38, %v2665_v31 }
0x14fd   :  { %2674 = vadd.xlane.f32.xlu1 %v2673_v50 }
0x14fe   :  { %v2676_v6 = vsel %vm88_vm1, %v2671_v60, 0.0 }
0x14ff   :  { %2677 = vadd.xlane.f32.xlu0 %v2676_v6 }
0x158a   :  { %v2675_v11 = vpop.xlane.xlu1 %2674 }
0x158b   :  { %v2679_v47 = vmul.f32 0.03125, %v2675_v11 }
0x158c   :  { %v2678_v14 = vpop.xlane.xlu0 %2677 }
0x158d   :  { %v2681_v15 = vsub.f32 %v2670_v5, %v2679_v47  ;;  %v2680_v16 = vmul.f32 0.03125, %v2678_v14 }
0x158f   :  { %v2682_v7 = vsub.f32 %v2671_v60, %v2680_v16  ;;  %v2683_v12 = vmul.f32 %v2681_v15, %v2681_v15 }
0x1591   :  { %v2685_v49 = vsel %vm88_vm1, %v2683_v12, 0.0  ;;  %v2684_v39 = vmul.f32 %v2682_v7, %v2682_v7 }
0x1592   :  { %2686 = vadd.xlane.f32.xlu1 %v2685_v49 }
0x1593   :  { %v2688_v19 = vsel %vm88_vm1, %v2684_v39, 0.0 }
0x1594   :  { %2689 = vadd.xlane.f32.xlu0 %v2688_v19 }
0x161f   :  { %v2687_v23 = vpop.xlane.xlu1 %2686 }
0x1620   :  { %v2691_v20 = vmul.f32 0.03125, %v2687_v23 }
0x1621   :  { %v2690_v52 = vpop.xlane.xlu0 %2689 }
0x1622   :  { %v2693_v62 = vadd.f32 1e-05, %v2691_v20  ;;  %v2692_v2 = vmul.f32 0.03125, %v2690_v52 }
0x1624   :  { %3342 = vrsqrt.f32 %v2693_v62  ;;  %v2694_v21 = vadd.f32 1e-05, %v2692_v2 }
0x1626   :  { %3344 = vrsqrt.f32 %v2694_v21 }
0x162e   :  { %v3343_v29 = vpop.eup %3342 }
0x162f   :  { %v2697_v35 = vmul.f32 %v3343_v29, %v2681_v15 }
0x1630   :  { %v3345_v26 = vpop.eup %3344 }
0x1631   :  { %v2698_v33 = vmul.f32 %v3345_v26, %v2682_v7  ;;  %v2703_v0 = vmul.f32 %v2702_v30, %v2697_v35 }
0x1633   :  { %v2704_v37 = vmul.f32 %v2702_v30, %v2698_v33  ;;  %v2709_v3 = vadd.f32 %v2708_v36, %v2703_v0 }
0x1635   :  { %v2710_v4 = vadd.f32 %v2708_v36, %v2704_v37  ;;  %2711 = vst.msk [vmem:[#allocation5] sm:$0xff] %vm88_vm1, %v2709_v3 }
0x1637   :  { %2712 = vst.msk [vmem:[#allocation5 + $0x8] sm:$0xff] %vm88_vm1, %v2710_v4 }
0x1638   :  { %3379 = shalt.err (!%p3376_p12)
}
0x1639   :  { %s3380_s19 = scalar_lea.hbm %s4098_s8, 256 }
0x163a   :  { %p3381_p13 = scmp.ne.s32.totalorder %s4098_s8, %s3380_s19  ;;  %p3384_p0 = scmp.lt.u32.totalorder %s3380_s19, %s4098_s8 }
0x163c   :  { %p3386_p1 = pnand %p3384_p0, %p3381_p13 }
0x163e   :  { %3389 = shalt.err (!%p3386_p1)
}
0x163f   :  { %2724 = dma.vmem_to_hbm [thread:$0]  %s2719_s14, 256, %s4098_s8, [#allocation4], %s3395_s15, %s3395_s15, %s3396_s16  }
0x1640   :  { %3392 = dma.done.wait [#allocation4], 256  }
0x1641   :  { %3393 = vsyncadd [#allocation4], 4294967040 }
0x1642   :  { %2728 = vsyncpa [#allocation3], 1 }
0x1643   :  { %2729 = vsyncpa [#allocation4], 1 }

</bundles_post_ra>
